<compile_context>
chip_gen: v7x
topology: tpu7x:2x2x1
jax: 0.10.0
libtpu: 0.0.40
codegen_flags: <defaults>
</compile_context>

<pallas_src>
import jax
import jax.numpy as jnp
from jax.experimental import pallas as pl
from jax.experimental.pallas import tpu as pltpu

FEAT_C = 2048  # backbone output channels (nn.Linear(2048, dim))


def _feat_vmem_budget_bytes():
    """Per-generation budget for in-flight (multi-buffered) feature blocks."""
    try:
        vmem = int(pltpu.get_tpu_info().vmem_capacity_bytes)
    except Exception:
        vmem = 64 * 1024 * 1024  # conservative (v7x-sized) fallback
    if vmem >= 100 * 1024 * 1024:      # v5e / v6e: 128 MiB physical VMEM
        return 48 * 1024 * 1024
    return 20 * 1024 * 1024            # v7x: 64 MiB per TensorCore


def hfln_kernel(feat_ref, w_ref, b_ref, out_ref):
    # feat_ref: [TN, HW, C]   w_ref: [C, Dp] (pre-scaled by 1/HW)   b_ref: [1, Dp]
    # Global-avg-pool as a plain sublane-axis sum with f32 accumulation; this
    # is VPU/XLU work that hides completely under the feature DMA.
    pooled = jnp.sum(feat_ref[...], axis=1, dtype=jnp.float32)       # [TN, C]
    # fc on the MXU; the 1/HW mean normalization is already folded into W.
    y = jnp.dot(pooled, w_ref[...], preferred_element_type=jnp.float32)
    out_ref[...] = (y + b_ref[...]).astype(out_ref.dtype)


def hfln_forward(feat_nhwc, w_cd, b_d, *, max_feat_vmem_bytes=None):
    """HFLN forward on pre-pool backbone features.

    feat_nhwc: [N, H, W, C] channels-last features from the frozen backbone
               (arrange the backbone to emit channels-last; avoids an extra
               HBM transpose of the dominant tensor).  Prefer bf16 here — the
               kernel is HBM-bandwidth bound and halving the feature dtype
               halves bytes moved; accumulation stays f32.
    w_cd:      [C, D]  (transpose of torch fc.weight [D, C])
    b_d:       [D]
    """
    # TODO(synk): the frozen conv backbone (model.children()[:-1] minus its
    # final avg-pool) is an arbitrary pretrained network and is not
    # reimplemented; this kernel covers avg-pool + squeeze + fc exactly.
    n, h, w, c = feat_nhwc.shape
    assert c == FEAT_C
    hw = h * w
    d = w_cd.shape[1]

    feat = feat_nhwc.reshape(n, hw, c)               # free reshape, no movement

    # Fold the 1/HW mean normalization into the (small, host-side) weights.
    w_cd = (w_cd.astype(jnp.float32) * (1.0 / hw)).astype(w_cd.dtype)

    # Lane-dense output: pad D up to a multiple of 128, slice back afterwards.
    d_pad = max(128, ((d + 127) // 128) * 128)
    if d_pad != d:
        w_cd = jnp.pad(w_cd, ((0, 0), (0, d_pad - d)))
        b_d = jnp.pad(b_d, (0, d_pad - d))
    b2 = b_d.reshape(1, d_pad)

    # Dtype-aware VMEM block estimate: sublane tile is 8 for f32, 16 for bf16,
    # 32 for int8/fp8 (packed sublanes).
    itemsize = jnp.dtype(feat.dtype).itemsize
    sublane = 8 * (4 // itemsize)
    hw_pad = ((hw + sublane - 1) // sublane) * sublane
    row_bytes = hw_pad * c * itemsize                # one batch row in VMEM

    budget = max_feat_vmem_bytes or _feat_vmem_budget_bytes()
    n_buf = 3                                        # Buffered(3) feature stream
    tn_fit = budget // (n_buf * row_bytes)
    if tn_fit >= n:
        if n >= 16:
            # Keep >= 2 grid steps so "parallel" can shard across v7x's 2 TCs.
            tn = min(n, max(8, ((pl.cdiv(n, 2) + 7) // 8) * 8))
        else:
            tn = n
    else:
        tn = max(8, (tn_fit // 8) * 8)               # keep output block 8-aligned
    num_steps = pl.cdiv(n, tn)
    grid = (num_steps,)

    if num_steps > 1:
        # Per-step compute is tiny vs. the feature DMA: a third buffer smooths
        # the HBM stream toward roofline.
        feat_spec = pl.BlockSpec((tn, hw, c), lambda i: (i, 0, 0),
                                 pipeline_mode=pl.Buffered(3))
    else:
        feat_spec = pl.BlockSpec((tn, hw, c), lambda i: (i, 0, 0))

    out_dtype = jnp.promote_types(feat.dtype, w_cd.dtype)
    w_bytes = c * d_pad * jnp.dtype(w_cd.dtype).itemsize
    out_tile_bytes = tn * d_pad * jnp.dtype(out_dtype).itemsize
    vmem_limit = int(n_buf * tn * row_bytes + 2 * w_bytes + 2 * out_tile_bytes
                     + 8 * 1024 * 1024)

    cost = pl.CostEstimate(
        flops=2 * n * c * d_pad + n * hw * c,
        transcendentals=0,
        bytes_accessed=(n * hw * c * itemsize + w_bytes
                        + n * d_pad * jnp.dtype(out_dtype).itemsize),
    )

    out = pl.pallas_call(
        hfln_kernel,
        out_shape=jax.ShapeDtypeStruct((n, d_pad), out_dtype),
        grid=grid,
        in_specs=[
            feat_spec,                                       # batch-tiled features
            pl.BlockSpec((c, d_pad), lambda i: (0, 0)),      # W: VMEM-resident
            pl.BlockSpec((1, d_pad), lambda i: (0, 0)),      # b: VMEM-resident
        ],
        out_specs=pl.BlockSpec((tn, d_pad), lambda i: (i, 0)),
        compiler_params=pltpu.CompilerParams(
            dimension_semantics=("parallel",),               # both TCs on v7x
            vmem_limit_bytes=vmem_limit,
        ),
        cost_estimate=cost,
    )(feat, w_cd, b2)

    # torch .squeeze() maps [N, 2048, 1, 1] -> [N, 2048] (it would also drop
    # the batch dim when N == 1 — PyTorch quirk intentionally not replicated).
    return out[:, :d] if d_pad != d else out


if __name__ == "__main__":
    key = jax.random.PRNGKey(0)
    k_feat, k_w, k_b = jax.random.split(key, 3)

    N, H, W = 2, 7, 7   # ResNet-style final feature map before avg-pool
    DIM = 128           # cfg.dimension

    # nn.Linear(2048, DIM) parameters, PyTorch-style uniform init.
    bound = 1.0 / (FEAT_C ** 0.5)
    w = jax.random.uniform(k_w, (FEAT_C, DIM), jnp.float32, -bound, bound)
    b = jax.random.uniform(k_b, (DIM,), jnp.float32, -bound, bound)

    # 1) f32 features, single grid step.
    feat32 = jax.random.normal(k_feat, (N, H, W, FEAT_C), dtype=jnp.float32)
    out32 = jax.block_until_ready(hfln_forward(feat32, w, b))
    ref32 = jnp.mean(feat32, axis=(1, 2)) @ w + b
    assert out32.shape == (N, DIM)
    assert jnp.allclose(out32, ref32, atol=1e-4, rtol=1e-4)

    # 2) bf16 features (recommended contract: half the HBM traffic) with a
    #    batch + tiny budget that exercises the multi-step Buffered(3)
    #    pipeline and a partial tail block.
    N2 = 20
    feat16 = jax.random.normal(k_feat, (N2, H, W, FEAT_C),
                               dtype=jnp.float32).astype(jnp.bfloat16)
    out16 = jax.block_until_ready(
        hfln_forward(feat16, w, b, max_feat_vmem_bytes=2 * 1024 * 1024))
    ref16 = jnp.mean(feat16.astype(jnp.float32), axis=(1, 2)) @ w + b
    assert out16.shape == (N2, DIM)
    assert jnp.allclose(out16, ref16, atol=2e-3, rtol=2e-3)

    print("KERNEL_OK")
</pallas_src>

<mosaic_0001>
module attributes {stable_mosaic.version = 11 : i64} {
  func.func @hfln_kernel(%arg0: i32, %arg1: memref<2x49x2048xf32, #tpu.memory_space<vmem>>, %arg2: memref<2048x128xf32, #tpu.memory_space<vmem>>, %arg3: memref<1x128xf32, #tpu.memory_space<vmem>>, %arg4: memref<2x128xf32, #tpu.memory_space<vmem>>) attributes {dimension_semantics = [#tpu.dimension_semantics<parallel>], iteration_bounds = array<i64: 1>, scalar_prefetch = 0 : i64, scratch_operands = 0 : i64, tpu.core_type = #tpu.core_type<tc>, window_params = [{transform_indices = @transform_0, window_bounds = array<i64: 2, 49, 2048>}, {pipeline_mode = #tpu.pipeline_mode<synchronous>, transform_indices = @transform_1, window_bounds = array<i64: 2048, 128>}, {pipeline_mode = #tpu.pipeline_mode<synchronous>, transform_indices = @transform_2, window_bounds = array<i64: 1, 128>}, {transform_indices = @transform_3, window_bounds = array<i64: 2, 128>}]} {
    %c0 = arith.constant 0 : index
    %c0_0 = arith.constant 0 : index
    %c0_1 = arith.constant 0 : index
    %0 = vector.load %arg1[%c0, %c0_0, %c0_1] : memref<2x49x2048xf32, #tpu.memory_space<vmem>>, vector<2x49x2048xf32>
    %cst = arith.constant dense<0.000000e+00> : vector<2x2048xf32>
    %1 = vector.multi_reduction <add>, %0, %cst [1] : vector<2x49x2048xf32> to vector<2x2048xf32>
    %c0_2 = arith.constant 0 : index
    %c0_3 = arith.constant 0 : index
    %2 = vector.load %arg2[%c0_2, %c0_3] : memref<2048x128xf32, #tpu.memory_space<vmem>>, vector<2048x128xf32>
    %cst_4 = arith.constant dense<0.000000e+00> : vector<2x128xf32>
    %3 = tpu.matmul %1, %2, %cst_4 {dimension_numbers = #tpu.dot_dimension_numbers<[1], [0], [0], [1], [0, 0, 1, 1], [], []>} : vector<2x2048xf32>, vector<2048x128xf32>, vector<2x128xf32> -> vector<2x128xf32>
    %c0_5 = arith.constant 0 : index
    %c0_6 = arith.constant 0 : index
    %4 = vector.load %arg3[%c0_5, %c0_6] : memref<1x128xf32, #tpu.memory_space<vmem>>, vector<1x128xf32>
    %5 = vector.broadcast %4 : vector<1x128xf32> to vector<2x128xf32>
    %6 = arith.addf %3, %5 : vector<2x128xf32>
    %c0_7 = arith.constant 0 : index
    %c0_8 = arith.constant 0 : index
    %7 = vector.load %arg4[%c0_7, %c0_8] : memref<2x128xf32, #tpu.memory_space<vmem>>, vector<2x128xf32>
    tpu.vector_store %arg4[%c0_7, %c0_8], %6 {strides = array<i32>} : memref<2x128xf32, #tpu.memory_space<vmem>>, vector<2x128xf32>,
    return
  }
  func.func @transform_0(%arg0: i32) -> (i32, i32, i32) {
    %c0_i32 = arith.constant 0 : i32
    %c0_i32_0 = arith.constant 0 : i32
    %c0_i32_1 = arith.constant 0 : i32
    return %arg0, %c0_i32, %c0_i32_0 : i32, i32, i32
  }
  func.func @transform_1(%arg0: i32) -> (i32, i32) {
    %c0_i32 = arith.constant 0 : i32
    %c0_i32_0 = arith.constant 0 : i32
    %c0_i32_1 = arith.constant 0 : i32
    return %c0_i32, %c0_i32_0 : i32, i32
  }
  func.func @transform_2(%arg0: i32) -> (i32, i32) {
    %c0_i32 = arith.constant 0 : i32
    %c0_i32_0 = arith.constant 0 : i32
    %c0_i32_1 = arith.constant 0 : i32
    return %c0_i32, %c0_i32_0 : i32, i32
  }
  func.func @transform_3(%arg0: i32) -> (i32, i32) {
    %c0_i32 = arith.constant 0 : i32
    %c0_i32_0 = arith.constant 0 : i32
    return %arg0, %c0_i32 : i32, i32
  }
}

</mosaic_0001>

<bundles_post_ra>
// kernel: tpu_custom_call.1
= control target key start
LH: loop header
LB: loop body
LE: loop exit
PB: predicated region body
PF: predicated region fallthrough
CT: control target
= control target key end

     0   :  { %vm244_vm0 = vcmask 1040384   ;;  %vm951_vm1 = vcmask 1041409   ;;  %s4209_s0 = inlined_call_operand.vmem [shape: f32[2,49,2048], index: 0, kind: input, shape index: {}]   ;;  %s4210_s1 = inlined_call_operand.vmem [shape: f32[2048,128], index: 1, kind: input, shape index: {}]   ;;  %s4211_s2 = inlined_call_operand.vmem [shape: f32[1,128], index: 2, kind: input, shape index: {}]   ;;  %s4212_s3 = inlined_call_operand.hbm [shape: f32[2,128], index: 3, kind: output, shape index: {}]  }
   0x1   :  { %v672_v0 = vld [vmem:[%s4210_s1 + $0x80] sm:$0xff]  ;;  %v673_v1 = vld [vmem:[%s4210_s1 + $0x88] sm:$0xff]  ;;  %v674_v11 = vld [vmem:[%s4210_s1 + $0x90] sm:$0xff] }
   0x2   :  { %v656_v2 = vld [vmem:[%s4210_s1] sm:$0xff]  ;;  %v1840_v3 = vpack.c.bf16 %v673_v1, %v672_v0  ;;  %v657_v4 = vld [vmem:[%s4210_s1 + $0x8] sm:$0xff]  ;;  %v675_v13 = vld [vmem:[%s4210_s1 + $0x98] sm:$0xff] }
   0x3   :  { %v704_v5 = vld [vmem:[%s4210_s1 + $0x180] sm:$0xff]  ;;  %v705_v6 = vld [vmem:[%s4210_s1 + $0x188] sm:$0xff]  ;;  %v1842_v7 = vpack.c.bf16 %v657_v4, %v656_v2  ;;  %v658_v14 = vld [vmem:[%s4210_s1 + $0x10] sm:$0xff]  ;;  %v1844_v16 = vpack.c.bf16 %v675_v13, %v674_v11 }
   0x4   :  { %v1872_v8 = vpack.c.bf16 %v705_v6, %v704_v5  ;;  %v688_v9 = vld [vmem:[%s4210_s1 + $0x100] sm:$0xff]  ;;  %v689_v10 = vld [vmem:[%s4210_s1 + $0x108] sm:$0xff]  ;;  %1841 = vmatprep.subr.bf16.mxu0 %v1840_v3  ;;  %v659_v15 = vld [vmem:[%s4210_s1 + $0x18] sm:$0xff] }
   0x5   :  { %v1874_v12 = vpack.c.bf16 %v689_v10, %v688_v9  ;;  %1843 = vmatpush3.bf16.msra.mxu0 %v1842_v7  ;;  %v1846_v17 = vpack.c.bf16 %v659_v15, %v658_v14  ;;  %v706_v18 = vld [vmem:[%s4210_s1 + $0x190] sm:$0xff]  ;;  %v707_v19 = vld [vmem:[%s4210_s1 + $0x198] sm:$0xff]  ;;  %v676_v23 = vld [vmem:[%s4210_s1 + $0xa0] sm:$0xff] }
   0x6   :  { %1873 = vmatprep.subr.bf16.mxu1 %v1872_v8  ;;  %v690_v20 = vld [vmem:[%s4210_s1 + $0x110] sm:$0xff]  ;;  %v1876_v21 = vpack.c.bf16 %v707_v19, %v706_v18  ;;  %v691_v22 = vld [vmem:[%s4210_s1 + $0x118] sm:$0xff]  ;;  %v677_v24 = vld [vmem:[%s4210_s1 + $0xa8] sm:$0xff]  ;;  %1845 = vmatprep.subr.bf16.mxu0 %v1844_v16 }
   0x7   :  { %1875 = vmatpush3.bf16.msra.mxu1 %v1874_v12  ;;  %v1878_v25 = vpack.c.bf16 %v691_v22, %v690_v20  ;;  %v1848_v26 = vpack.c.bf16 %v677_v24, %v676_v23  ;;  %v660_v27 = vld [vmem:[%s4210_s1 + $0x20] sm:$0xff]  ;;  %v661_v28 = vld [vmem:[%s4210_s1 + $0x28] sm:$0xff]  ;;  %v678_v35 = vld [vmem:[%s4210_s1 + $0xb0] sm:$0xff] }
   0x8   :  { %v708_v29 = vld [vmem:[%s4210_s1 + $0x1a0] sm:$0xff]  ;;  %1877 = vmatprep.subr.bf16.mxu1 %v1876_v21  ;;  %v709_v30 = vld [vmem:[%s4210_s1 + $0x1a8] sm:$0xff]  ;;  %v1850_v33 = vpack.c.bf16 %v661_v28, %v660_v27  ;;  %v679_v36 = vld [vmem:[%s4210_s1 + $0xb8] sm:$0xff] }
   0x9   :  { %v692_v31 = vld [vmem:[%s4210_s1 + $0x120] sm:$0xff]  ;;  %v693_v32 = vld [vmem:[%s4210_s1 + $0x128] sm:$0xff]  ;;  %1847 = vmatpush3.bf16.msra.mxu0 %v1846_v17  ;;  %v1880_v34 = vpack.c.bf16 %v709_v30, %v708_v29  ;;  %v662_v37 = vld [vmem:[%s4210_s1 + $0x30] sm:$0xff]  ;;  %v1852_v39 = vpack.c.bf16 %v679_v36, %v678_v35 }
   0xa   :  { %1849 = vmatprep.subr.bf16.mxu0 %v1848_v26  ;;  %v1882_v38 = vpack.c.bf16 %v693_v32, %v692_v31  ;;  %v663_v40 = vld [vmem:[%s4210_s1 + $0x38] sm:$0xff]  ;;  %v710_v41 = vld [vmem:[%s4210_s1 + $0x1b0] sm:$0xff]  ;;  %v680_v46 = vld [vmem:[%s4210_s1 + $0xc0] sm:$0xff] }
   0xb   :  { %1879 = vmatpush3.bf16.msra.mxu1 %v1878_v25  ;;  %v711_v42 = vld [vmem:[%s4210_s1 + $0x1b8] sm:$0xff]  ;;  %v694_v44 = vld [vmem:[%s4210_s1 + $0x130] sm:$0xff]  ;;  %v681_v47 = vld [vmem:[%s4210_s1 + $0xc8] sm:$0xff]  ;;  %v1854_v48 = vpack.c.bf16 %v663_v40, %v662_v37 }
   0xc   :  { %1881 = vmatprep.subr.bf16.mxu1 %v1880_v34  ;;  %v1884_v43 = vpack.c.bf16 %v711_v42, %v710_v41  ;;  %v695_v45 = vld [vmem:[%s4210_s1 + $0x138] sm:$0xff]  ;;  %v712_v49 = vld [vmem:[%s4210_s1 + $0x1c0] sm:$0xff]  ;;  %v713_v50 = vld [vmem:[%s4210_s1 + $0x1c8] sm:$0xff]  ;;  %v1856_v52 = vpack.c.bf16 %v681_v47, %v680_v46 }
   0xd   :  { %1851 = vmatpush3.bf16.msra.mxu0 %v1850_v33  ;;  %v1886_v51 = vpack.c.bf16 %v695_v45, %v694_v44  ;;  %v664_v53 = vld [vmem:[%s4210_s1 + $0x40] sm:$0xff]  ;;  %v665_v54 = vld [vmem:[%s4210_s1 + $0x48] sm:$0xff]  ;;  %v1888_v56 = vpack.c.bf16 %v713_v50, %v712_v49  ;;  %v682_v58 = vld [vmem:[%s4210_s1 + $0xd0] sm:$0xff] }
   0xe   :  { %1853 = vmatprep.subr.bf16.mxu0 %v1852_v39  ;;  %v696_v55 = vld [vmem:[%s4210_s1 + $0x140] sm:$0xff]  ;;  %v697_v57 = vld [vmem:[%s4210_s1 + $0x148] sm:$0xff]  ;;  %v683_v59 = vld [vmem:[%s4210_s1 + $0xd8] sm:$0xff]  ;;  %v1858_v62 = vpack.c.bf16 %v665_v54, %v664_v53 }
   0xf   :  { %1883 = vmatpush3.bf16.msra.mxu1 %v1882_v38  ;;  %v714_v60 = vld [vmem:[%s4210_s1 + $0x1d0] sm:$0xff]  ;;  %v715_v61 = vld [vmem:[%s4210_s1 + $0x1d8] sm:$0xff]  ;;  %v1890_v63 = vpack.c.bf16 %v697_v57, %v696_v55  ;;  %v1860_v0 = vpack.c.bf16 %v683_v59, %v682_v58  ;;  %v684_v6 = vld [vmem:[%s4210_s1 + $0xe0] sm:$0xff] }
  0x10   :  { %1885 = vmatprep.subr.bf16.mxu1 %v1884_v43  ;;  %v666_v1 = vld [vmem:[%s4210_s1 + $0x50] sm:$0xff]  ;;  %v667_v2 = vld [vmem:[%s4210_s1 + $0x58] sm:$0xff]  ;;  %v1892_v4 = vpack.c.bf16 %v715_v61, %v714_v60  ;;  %v685_v7 = vld [vmem:[%s4210_s1 + $0xe8] sm:$0xff] }
  0x11   :  { %1855 = vmatpush3.bf16.msra.mxu0 %v1854_v48  ;;  %v698_v3 = vld [vmem:[%s4210_s1 + $0x150] sm:$0xff]  ;;  %v699_v5 = vld [vmem:[%s4210_s1 + $0x158] sm:$0xff]  ;;  %v668_v8 = vld [vmem:[%s4210_s1 + $0x60] sm:$0xff]  ;;  %v1862_v12 = vpack.c.bf16 %v667_v2, %v666_v1  ;;  %v1864_v17 = vpack.c.bf16 %v685_v7, %v684_v6 }
  0x12   :  { %1857 = vmatprep.subr.bf16.mxu0 %v1856_v52  ;;  %v669_v9 = vld [vmem:[%s4210_s1 + $0x68] sm:$0xff]  ;;  %v716_v10 = vld [vmem:[%s4210_s1 + $0x1e0] sm:$0xff]  ;;  %v686_v15 = vld [vmem:[%s4210_s1 + $0xf0] sm:$0xff]  ;;  %v1894_v16 = vpack.c.bf16 %v699_v5, %v698_v3 }
  0x13   :  { %1887 = vmatpush3.bf16.msra.mxu1 %v1886_v51  ;;  %v717_v11 = vld [vmem:[%s4210_s1 + $0x1e8] sm:$0xff]  ;;  %v700_v13 = vld [vmem:[%s4210_s1 + $0x160] sm:$0xff]  ;;  %v687_v18 = vld [vmem:[%s4210_s1 + $0xf8] sm:$0xff]  ;;  %v1866_v31 = vpack.c.bf16 %v669_v9, %v668_v8 }
  0x14   :  { %1889 = vmatprep.subr.bf16.mxu1 %v1888_v56  ;;  %v701_v14 = vld [vmem:[%s4210_s1 + $0x168] sm:$0xff]  ;;  %v1896_v21 = vpack.c.bf16 %v717_v11, %v716_v10  ;;  %v718_v22 = vld [vmem:[%s4210_s1 + $0x1f0] sm:$0xff]  ;;  %v719_v23 = vld [vmem:[%s4210_s1 + $0x1f8] sm:$0xff]  ;;  %v1868_v37 = vpack.c.bf16 %v687_v18, %v686_v15 }
  0x15   :  { %1859 = vmatpush3.bf16.msra.mxu0 %v1858_v62  ;;  %v16_v19 = vld [vmem:[%s4209_s0 + $0x8] sm:$0xff]  ;;  %v670_v26 = vld [vmem:[%s4210_s1 + $0x70] sm:$0xff]  ;;  %v671_v27 = vld [vmem:[%s4210_s1 + $0x78] sm:$0xff]  ;;  %v1898_v36 = vpack.c.bf16 %v701_v14, %v700_v13  ;;  %v1900_v42 = vpack.c.bf16 %v719_v23, %v718_v22 }
  0x16   :  { %1861 = vmatprep.subr.bf16.mxu0 %v1860_v0  ;;  %v32_v20 = vld [vmem:[%s4209_s0 + $0x88] sm:$0xff]  ;;  %v2340_v28 = vld [vmem:[%s4210_s1 + $0x170] sm:$0xff]  ;;  %v703_v32 = vld [vmem:[%s4210_s1 + $0x178] sm:$0xff]  ;;  %v1870_v51 = vpack.c.bf16 %v671_v27, %v670_v26 }
  0x17   :  { %1891 = vmatpush3.bf16.msra.mxu1 %v1890_v63  ;;  %v48_v24 = vld [vmem:[%s4209_s0 + $0x108] sm:$0xff]  ;;  %v253_v25 = vadd.f32 %v32_v20, %v16_v19  ;;  %v15_v44 = vld [vmem:[%s4209_s0] sm:$0xff]  ;;  %v1902_v52 = vpack.c.bf16 %v703_v32, %v2340_v28  ;;  %v18_v9 = vld [vmem:[%s4209_s0 + $0x18] sm:$0xff] }
  0x18   :  { %1893 = vmatprep.subr.bf16.mxu1 %v1892_v4  ;;  %v64_v29 = vld [vmem:[%s4209_s0 + $0x188] sm:$0xff]  ;;  %v31_v45 = vld [vmem:[%s4209_s0 + $0x80] sm:$0xff]  ;;  %v34_v10 = vld [vmem:[%s4209_s0 + $0x98] sm:$0xff] }
  0x19   :  { %v128_v30 = vld [vmem:[%s4209_s0 + $0x388] sm:$0xff]  ;;  %1863 = vmatpush3.bf16.msra.mxu0 %v1862_v12  ;;  %v254_v35 = vadd.f32 %v253_v25, %v48_v24  ;;  %v47_v46 = vld [vmem:[%s4209_s0 + $0x100] sm:$0xff]  ;;  %v239_v50 = vadd.f32 %v31_v45, %v15_v44  ;;  %v66_v22 = vld [vmem:[%s4209_s0 + $0x198] sm:$0xff] }
  0x1a   :  { %v144_v33 = vld [vmem:[%s4209_s0 + $0x408] sm:$0xff]  ;;  %1865 = vmatprep.subr.bf16.mxu0 %v1864_v17  ;;  %v63_v55 = vld [vmem:[%s4209_s0 + $0x180] sm:$0xff]  ;;  %v279_v17 = vadd.f32 %v34_v10, %v18_v9  ;;  %v130_v23 = vld [vmem:[%s4209_s0 + $0x398] sm:$0xff] }
  0x1b   :  { %v160_v34 = vld [vmem:[%s4209_s0 + $0x488] sm:$0xff]  ;;  %1895 = vmatpush3.bf16.msra.mxu1 %v1894_v16  ;;  %v461_v41 = vadd.f32 %v144_v33, %v128_v30  ;;  %v255_v43 = vadd.f32 %v254_v35, %v64_v29  ;;  %v127_v56 = vld [vmem:[%s4209_s0 + $0x380] sm:$0xff]  ;;  %v240_v63 = vadd.f32 %v239_v50, %v47_v46  ;;  %v50_v16 = vld [vmem:[%s4209_s0 + $0x118] sm:$0xff] }
  0x1c   :  { %v80_v38 = vld [vmem:[%s4209_s0 + $0x208] sm:$0xff]  ;;  %1897 = vmatprep.subr.bf16.mxu1 %v1896_v21  ;;  %v143_v57 = vld [vmem:[%s4209_s0 + $0x400] sm:$0xff]  ;;  %v146_v27 = vld [vmem:[%s4209_s0 + $0x418] sm:$0xff]  ;;  %v280_v29 = vadd.f32 %v279_v17, %v50_v16 }
  0x1d   :  { %v112_v39 = vld [vmem:[%s4209_s0 + $0x308] sm:$0x1]  ;;  %v462_v49 = vadd.f32 %v461_v41, %v160_v34  ;;  %1867 = vmatpush3.bf16.msra.mxu0 %v1866_v31  ;;  %v256_v54 = vadd.f32 %v255_v43, %v80_v38  ;;  %v79_v61 = vld [vmem:[%s4209_s0 + $0x200] sm:$0xff]  ;;  %v448_v0 = vadd.f32 %v143_v57, %v127_v56  ;;  %v241_v6 = vadd.f32 %v240_v63, %v63_v55  ;;  %v162_v28 = vld [vmem:[%s4209_s0 + $0x498] sm:$0xff] }
  0x1e   :  { %v176_v40 = vld [vmem:[%s4209_s0 + $0x508] sm:$0xff]  ;;  %1869 = vmatprep.subr.bf16.mxu0 %v1868_v37  ;;  %v258_v59 = vsel %vm244_vm0, %v112_v39, 0.0  ;;  %v159_v62 = vld [vmem:[%s4209_s0 + $0x480] sm:$0xff]  ;;  %v82_v33 = vld [vmem:[%s4209_s0 + $0x218] sm:$0xff]  ;;  %v281_v41 = vadd.f32 %v280_v29, %v66_v22 }
  0x1f   :  { %v96_v47 = vld [vmem:[%s4209_s0 + $0x288] sm:$0xff]  ;;  %1899 = vmatpush3.bf16.msra.mxu1 %v1898_v36  ;;  %v463_v60 = vadd.f32 %v462_v49, %v176_v40  ;;  %v111_v2 = vld [vmem:[%s4209_s0 + $0x300] sm:$0x1]  ;;  %v449_v7 = vadd.f32 %v448_v0, %v159_v62  ;;  %v242_v20 = vadd.f32 %v241_v6, %v79_v61  ;;  %v98_v34 = vld [vmem:[%s4209_s0 + $0x298] sm:$0xff]  ;;  %v487_v36 = vadd.f32 %v146_v27, %v130_v23 }
  0x20   :  { %v192_v48 = vld [vmem:[%s4209_s0 + $0x588] sm:$0xff]  ;;  %1901 = vmatprep.subr.bf16.mxu1 %v1900_v42  ;;  %v257_v1 = vadd.f32 %v256_v54, %v96_v47  ;;  %v175_v3 = vld [vmem:[%s4209_s0 + $0x500] sm:$0xff]  ;;  %v245_v26 = vsel %vm244_vm0, %v111_v2, 0.0  ;;  %v114_v35 = vld [vmem:[%s4209_s0 + $0x318] sm:$0x1] }
  0x21   :  { %v208_v53 = vld [vmem:[%s4209_s0 + $0x608] sm:$0xff]  ;;  %v736_v4 = vld [vmem:[%s4210_s1 + $0x280] sm:$0xff]  ;;  %v464_v5 = vadd.f32 %v463_v60, %v192_v48  ;;  %1871 = vmatpush3.bf16.msra.mxu0 %v1870_v51  ;;  %v450_v21 = vadd.f32 %v449_v7, %v175_v3  ;;  %v178_v39 = vld [vmem:[%s4209_s0 + $0x518] sm:$0xff]  ;;  %v488_v46 = vadd.f32 %v487_v36, %v162_v28 }
  0x22   :  { %v224_v58 = vld [vmem:[%s4209_s0 + $0x688] sm:$0x1]  ;;  %v259_v11 = vadd.f32 %v258_v59, %v257_v1  ;;  %v95_v13 = vld [vmem:[%s4209_s0 + $0x280] sm:$0xff]  ;;  %v226_v40 = vld [vmem:[%s4209_s0 + $0x698] sm:$0x1] }
  0x23   :  { %v737_v8 = vld [vmem:[%s4210_s1 + $0x288] sm:$0xff]  ;;  %v466_v12 = vsel %vm244_vm0, %v224_v58, 0.0  ;;  %v191_v14 = vld [vmem:[%s4209_s0 + $0x580] sm:$0xff]  ;;  %1903 = vmatpush3.bf16.msra.mxu1 %v1902_v52  ;;  %v465_v18 = vadd.f32 %v464_v5, %v208_v53  ;;  %v243_v31 = vadd.f32 %v242_v20, %v95_v13  ;;  %v17_v48 = vld [vmem:[%s4209_s0 + $0x10] sm:$0xff]  ;;  %v282_v52 = vadd.f32 %v281_v41, %v82_v33 }
  0x24   :  { %v1904_v15 = vpack.c.bf16 %v737_v8, %v736_v4  ;;  %v223_v19 = vld [vmem:[%s4209_s0 + $0x680] sm:$0x1]  ;;  %v260_v24 = vrot.slane %v259_v11, 4  ;;  %v451_v32 = vadd.f32 %v450_v21, %v191_v14  ;;  %v769_v47 = vld [vmem:[%s4210_s1 + $0x388] sm:$0xff]  ;;  %v33_v49 = vld [vmem:[%s4209_s0 + $0x90] sm:$0xff]  ;;  %v284_v53 = vsel %vm244_vm0, %v114_v35, 0.0 }
  0x25   :  { %v207_v25 = vld [vmem:[%s4209_s0 + $0x600] sm:$0xff]  ;;  %v467_v30 = vadd.f32 %v466_v12, %v465_v18  ;;  %v453_v38 = vsel %vm244_vm0, %v223_v19, 0.0  ;;  %v246_v44 = vadd.f32 %v245_v26, %v243_v31  ;;  %v194_v51 = vld [vmem:[%s4209_s0 + $0x598] sm:$0xff]  ;;  %v489_v58 = vadd.f32 %v488_v46, %v178_v39  ;;  %v49_v59 = vld [vmem:[%s4209_s0 + $0x110] sm:$0xff] }
  0x26   :  { %1905 = vmatprep.subr.bf16.mxu0 %v1904_v15  ;;  %v261_v37 = vadd.f32 %v260_v24, %v259_v11  ;;  %v768_v42 = vld [vmem:[%s4210_s1 + $0x380] sm:$0xff]  ;;  %v452_v45 = vadd.f32 %v451_v32, %v207_v25  ;;  %v129_v60 = vld [vmem:[%s4209_s0 + $0x390] sm:$0xff]  ;;  %v210_v62 = vld [vmem:[%s4209_s0 + $0x618] sm:$0xff]  ;;  %v283_v63 = vadd.f32 %v282_v52, %v98_v34  ;;  %v492_v0 = vsel %vm244_vm0, %v226_v40, 0.0 }
  0x27   :  { %v468_v43 = vrot.slane %v467_v30, 4  ;;  %v1936_v54 = vpack.c.bf16 %v769_v47, %v768_v42  ;;  %v247_v56 = vrot.slane %v246_v44, 4  ;;  %v145_v1 = vld [vmem:[%s4209_s0 + $0x410] sm:$0xff]  ;;  %v266_v2 = vadd.f32 %v33_v49, %v17_v48  ;;  %v720_v41 = vld [vmem:[%s4210_s1 + $0x200] sm:$0xff]  ;;  %v721_v42 = vld [vmem:[%s4210_s1 + $0x208] sm:$0xff] }
  0x28   :  { %v262_v50 = vrot.slane %v261_v37, 2  ;;  %v454_v57 = vadd.f32 %v453_v38, %v452_v45  ;;  %v490_v6 = vadd.f32 %v489_v58, %v194_v51  ;;  %v65_v7 = vld [vmem:[%s4209_s0 + $0x190] sm:$0xff]  ;;  %v285_v10 = vadd.f32 %v284_v53, %v283_v63  ;;  %v739_v51 = vld [vmem:[%s4210_s1 + $0x298] sm:$0xff] }
  0x29   :  { %v469_v55 = vadd.f32 %v468_v43, %v467_v30  ;;  %1937 = vmatprep.subr.bf16.mxu1 %v1936_v54  ;;  %v248_v4 = vadd.f32 %v247_v56, %v246_v44  ;;  %v161_v8 = vld [vmem:[%s4209_s0 + $0x490] sm:$0xff]  ;;  %v267_v11 = vadd.f32 %v266_v2, %v49_v59  ;;  %v474_v12 = vadd.f32 %v145_v1, %v129_v60  ;;  %v723_v63 = vld [vmem:[%s4210_s1 + $0x218] sm:$0xff]  ;;  %v740_v2 = vld [vmem:[%s4210_s1 + $0x2a0] sm:$0xff] }
  0x2a   :  { %v263_v61 = vadd.f32 %v262_v50, %v261_v37  ;;  %v455_v5 = vrot.slane %v454_v57, 4  ;;  %v491_v16 = vadd.f32 %v490_v6, %v210_v62  ;;  %v81_v17 = vld [vmem:[%s4209_s0 + $0x210] sm:$0xff]  ;;  %v286_v21 = vrot.slane %v285_v10, 4 }
  0x2b   :  { %v470_v3 = vrot.slane %v469_v55, 2  ;;  %v249_v14 = vrot.slane %v248_v4, 2  ;;  %v113_v18 = vld [vmem:[%s4209_s0 + $0x310] sm:$0x1]  ;;  %v268_v22 = vadd.f32 %v267_v11, %v65_v7  ;;  %v475_v23 = vadd.f32 %v474_v12, %v161_v8  ;;  %v724_v12 = vld [vmem:[%s4210_s1 + $0x220] sm:$0xff] }
  0x2c   :  { %v264_v9 = vrot.slane %v263_v61, 1  ;;  %v456_v15 = vadd.f32 %v455_v5, %v454_v57  ;;  %v177_v19 = vld [vmem:[%s4209_s0 + $0x510] sm:$0xff]  ;;  %v493_v27 = vadd.f32 %v492_v0, %v491_v16  ;;  %v287_v31 = vadd.f32 %v286_v21, %v285_v10  ;;  %v2565_v16 = vld [vmem:[%s4210_s1 + $0x308] sm:$0xff] }
  0x2d   :  { %v471_v13 = vadd.f32 %v470_v3, %v469_v55  ;;  %v250_v25 = vadd.f32 %v249_v14, %v248_v4  ;;  %v97_v28 = vld [vmem:[%s4209_s0 + $0x290] sm:$0xff]  ;;  %v269_v32 = vadd.f32 %v268_v22, %v81_v17  ;;  %v271_v33 = vsel %vm244_vm0, %v113_v18, 0.0  ;;  %v741_v3 = vld [vmem:[%s4210_s1 + $0x2a8] sm:$0xff]  ;;  %v743_v18 = vld [vmem:[%s4210_s1 + $0x2b8] sm:$0xff] }
  0x2e   :  { %v265_v20 = vadd.f32 %v264_v9, %v263_v61  ;;  %v457_v26 = vrot.slane %v456_v15, 2  ;;  %v193_v29 = vld [vmem:[%s4209_s0 + $0x590] sm:$0xff]  ;;  %v476_v34 = vadd.f32 %v475_v23, %v177_v19  ;;  %v494_v38 = vrot.slane %v493_v27, 4  ;;  %v2581_v22 = vld [vmem:[%s4210_s1 + $0x398] sm:$0xff] }
  0x2f   :  { %v472_v24 = vrot.slane %v471_v13, 1  ;;  %v225_v30 = vld [vmem:[%s4209_s0 + $0x690] sm:$0x1]  ;;  %v251_v36 = vrot.slane %v250_v25, 1  ;;  %v288_v40 = vrot.slane %v287_v31, 2  ;;  %v270_v43 = vadd.f32 %v269_v32, %v97_v28  ;;  %v2602_v28 = vld [vmem:[%s4210_s1 + $0x3a8] sm:$0xff] }
  0x30   :  { %v458_v37 = vadd.f32 %v457_v26, %v456_v15  ;;  %v209_v39 = vld [vmem:[%s4209_s0 + $0x610] sm:$0xff]  ;;  %v477_v44 = vadd.f32 %v476_v34, %v193_v29  ;;  %v479_v45 = vsel %vm244_vm0, %v225_v30, 0.0  ;;  %v495_v49 = vadd.f32 %v494_v38, %v493_v27  ;;  %v2560_v15 = vld [vmem:[%s4210_s1 + $0x300] sm:$0xff]  ;;  %v2612_v30 = vld [vmem:[%s4210_s1 + $0x328] sm:$0xff] }
  0x31   :  { %v473_v35 = vadd.f32 %v472_v24, %v471_v13  ;;  %v252_v47 = vadd.f32 %v251_v36, %v250_v25  ;;  %v738_v50 = vld [vmem:[%s4210_s1 + $0x290] sm:$0xff]  ;;  %v289_v52 = vadd.f32 %v288_v40, %v287_v31  ;;  %v272_v53 = vadd.f32 %v271_v33, %v270_v43  ;;  %v725_v13 = vld [vmem:[%s4210_s1 + $0x228] sm:$0xff]  ;;  %v2591_v24 = vld [vmem:[%s4210_s1 + $0x318] sm:$0xff] }
  0x32   :  { %v459_v48 = vrot.slane %v458_v37, 1  ;;  %v478_v54 = vadd.f32 %v477_v44, %v209_v39  ;;  %v496_v56 = vrot.slane %v495_v49, 2  ;;  %v1906_v57 = vpack.c.bf16 %v721_v42, %v720_v41  ;;  %v722_v62 = vld [vmem:[%s4210_s1 + $0x210] sm:$0xff]  ;;  %v2597_v27 = vld [vmem:[%s4210_s1 + $0x3a0] sm:$0xff]  ;;  %v2622_v32 = vld [vmem:[%s4210_s1 + $0x238] sm:$0xff] }
  0x33   :  { %v953_v46 = vsel %vm951_vm1, %v473_v35, %v265_v20  ;;  %v290_v58 = vrot.slane %v289_v52, 1  ;;  %v273_v59 = vrot.slane %v272_v53, 4  ;;  %v1908_v61 = vpack.c.bf16 %v739_v51, %v738_v50  ;;  %v742_v17 = vld [vmem:[%s4210_s1 + $0x2b0] sm:$0xff]  ;;  %v2607_v29 = vld [vmem:[%s4210_s1 + $0x320] sm:$0xff]  ;;  %v2642_v39 = vld [vmem:[%s4210_s1 + $0x338] sm:$0xff] }
  0x34   :  { %1048 = vmatprep.mubr.f32.mxu0 %v953_v46  ;;  %v460_v55 = vadd.f32 %v459_v48, %v458_v37  ;;  %v480_v60 = vadd.f32 %v479_v45, %v478_v54  ;;  %v497_v1 = vadd.f32 %v496_v56, %v495_v49  ;;  %v1910_v8 = vpack.c.bf16 %v723_v63, %v722_v62  ;;  %v2576_v21 = vld [vmem:[%s4210_s1 + $0x390] sm:$0xff]  ;;  %v2632_v37 = vld [vmem:[%s4210_s1 + $0x3b8] sm:$0xff]  ;;  %v2647_v40 = vld [vmem:[%s4210_s1 + $0x2c0] sm:$0xff] }
  0x35   :  { %v274_v4 = vadd.f32 %v273_v59, %v272_v53  ;;  %v291_v6 = vadd.f32 %v290_v58, %v289_v52  ;;  %v1912_v11 = vpack.c.bf16 %v741_v3, %v740_v2  ;;  %v2586_v23 = vld [vmem:[%s4210_s1 + $0x310] sm:$0xff]  ;;  %v1914_v26 = vpack.c.bf16 %v725_v13, %v724_v12  ;;  %v2652_v41 = vld [vmem:[%s4210_s1 + $0x2c8] sm:$0xff]  ;;  %v2657_v42 = vld [vmem:[%s4210_s1 + $0x240] sm:$0xff] }
  0x36   :  { %v952_v0 = vsel %vm951_vm1, %v460_v55, %v252_v47  ;;  %v481_v5 = vrot.slane %v480_v60, 4  ;;  %v498_v7 = vrot.slane %v497_v1, 1  ;;  %v2617_v31 = vld [vmem:[%s4210_s1 + $0x230] sm:$0xff]  ;;  %v1916_v35 = vpack.c.bf16 %v743_v18, %v742_v17  ;;  %v2662_v43 = vld [vmem:[%s4210_s1 + $0x248] sm:$0xff]  ;;  %v2667_v44 = vld [vmem:[%s4210_s1 + $0x3c0] sm:$0xff] }
  0x37   :  { %1049 = vmatmul.mubr.f32.vlgmr.msra.gmra.mrb[0].mxu0 %v952_v0  ;;  %v275_v9 = vrot.slane %v274_v4, 2  ;;  %v2627_v36 = vld [vmem:[%s4210_s1 + $0x3b0] sm:$0xff]  ;;  %v2672_v45 = vld [vmem:[%s4210_s1 + $0x3c8] sm:$0xff]  ;;  %v1938_v50 = vpack.c.bf16 %v2565_v16, %v2560_v15  ;;  %v2685_v51 = vld [vmem:[%s4210_s1 + $0x340] sm:$0xff]  ;;  %v1940_v54 = vpack.c.bf16 %v2581_v22, %v2576_v21  ;;  %v1942_v55 = vpack.c.bf16 %v2591_v24, %v2586_v23 }
  0x38   :  { %1907 = vmatpush3.bf16.msra.mxu0 %v1906_v57  ;;  %v482_v10 = vadd.f32 %v481_v5, %v480_v60  ;;  %v499_v14 = vadd.f32 %v498_v7, %v497_v1  ;;  %v2637_v38 = vld [vmem:[%s4210_s1 + $0x330] sm:$0xff]  ;;  %v20_v46 = vld [vmem:[%s4209_s0 + $0x28] sm:$0xff]  ;;  %v1918_v56 = vpack.c.bf16 %v2622_v32, %v2617_v31  ;;  %v2709_v58 = vld [vmem:[%s4210_s1 + $0x2d8] sm:$0xff]  ;;  %v1944_v2 = vpack.c.bf16 %v2602_v28, %v2597_v27 }
  0x39   :  { %1909 = vmatprep.subr.bf16.mxu0 %v1908_v61  ;;  %v276_v19 = vadd.f32 %v275_v9, %v274_v4  ;;  %v36_v47 = vld [vmem:[%s4209_s0 + $0xa8] sm:$0xff]  ;;  %v2704_v57 = vld [vmem:[%s4210_s1 + $0x2d0] sm:$0xff]  ;;  %v2719_v60 = vld [vmem:[%s4210_s1 + $0x258] sm:$0xff]  ;;  %v1946_v3 = vpack.c.bf16 %v2612_v30, %v2607_v29  ;;  %v1920_v4 = vpack.c.bf16 %v2652_v41, %v2647_v40  ;;  %v1922_v21 = vpack.c.bf16 %v2662_v43, %v2657_v42 }
  0x3a   :  { %v483_v20 = vrot.slane %v482_v10, 2  ;;  %v955_v25 = vsel %vm951_vm1, %v499_v14, %v291_v6  ;;  %v2690_v52 = vld [vmem:[%s4210_s1 + $0x348] sm:$0xff]  ;;  %v2714_v59 = vld [vmem:[%s4210_s1 + $0x250] sm:$0xff]  ;;  %v2729_v62 = vld [vmem:[%s4210_s1 + $0x3d8] sm:$0xff]  ;;  %v305_v0 = vadd.f32 %v36_v47, %v20_v46  ;;  %v1952_v22 = vpack.c.bf16 %v2672_v45, %v2667_v44 }
  0x3b   :  { %1118 = vmatprep.mubr.f32.mxu1 %v955_v25  ;;  %v277_v33 = vrot.slane %v276_v19, 1  ;;  %v52_v53 = vld [vmem:[%s4209_s0 + $0x128] sm:$0xff]  ;;  %v2724_v61 = vld [vmem:[%s4210_s1 + $0x3d0] sm:$0xff]  ;;  %v2748_v6 = vld [vmem:[%s4210_s1 + $0x358] sm:$0xff]  ;;  %v1954_v25 = vpack.c.bf16 %v2690_v52, %v2685_v51 }
  0x3c   :  { %1911 = vmatpush3.bf16.msra.mxu0 %v1910_v8  ;;  %v484_v34 = vadd.f32 %v483_v20, %v482_v10  ;;  %v132_v63 = vld [vmem:[%s4209_s0 + $0x3a8] sm:$0xff]  ;;  %v2743_v5 = vld [vmem:[%s4210_s1 + $0x350] sm:$0xff]  ;;  %v1948_v10 = vpack.c.bf16 %v2632_v37, %v2627_v36  ;;  %v2766_v12 = vld [vmem:[%s4210_s1 + $0x2e0] sm:$0xff]  ;;  %v306_v18 = vadd.f32 %v305_v0, %v52_v53  ;;  %v1926_v53 = vpack.c.bf16 %v2719_v60, %v2714_v59 }
  0x3d   :  { %1913 = vmatprep.subr.bf16.mxu0 %v1912_v11  ;;  %v278_v48 = vadd.f32 %v277_v33, %v276_v19  ;;  %v68_v7 = vld [vmem:[%s4209_s0 + $0x1a8] sm:$0xff]  ;;  %v1950_v11 = vpack.c.bf16 %v2642_v39, %v2637_v38  ;;  %v2776_v14 = vld [vmem:[%s4210_s1 + $0x260] sm:$0xff]  ;;  %v2848_v0 = vld [vmem:[%s4210_s1 + $0x2f8] sm:$0xff]  ;;  %v1958_v59 = vpack.c.bf16 %v2748_v6, %v2743_v5 }
  0x3e   :  { %v485_v49 = vrot.slane %v484_v34, 1  ;;  %v148_v8 = vld [vmem:[%s4209_s0 + $0x428] sm:$0xff]  ;;  %v19_v32 = vld [vmem:[%s4209_s0 + $0x20] sm:$0xff]  ;;  %v307_v46 = vadd.f32 %v306_v18, %v68_v7  ;;  %v2864_v60 = vld [vmem:[%s4210_s1 + $0x270] sm:$0xff] }
  0x3f   :  { %v164_v9 = vld [vmem:[%s4209_s0 + $0x4a8] sm:$0xff]  ;;  %v513_v19 = vadd.f32 %v148_v8, %v132_v63  ;;  %v35_v33 = vld [vmem:[%s4209_s0 + $0xa0] sm:$0xff]  ;;  %v2843_v63 = vld [vmem:[%s4210_s1 + $0x2f0] sm:$0xff] }
  0x40   :  { %1915 = vmatpush3.bf16.msra.mxu0 %v1914_v26  ;;  %v486_v1 = vadd.f32 %v485_v49, %v484_v34  ;;  %v2771_v13 = vld [vmem:[%s4210_s1 + $0x2e8] sm:$0xff]  ;;  %v2799_v26 = vld [vmem:[%s4210_s1 + $0x3e0] sm:$0xff]  ;;  %v1924_v49 = vpack.c.bf16 %v2709_v58, %v2704_v57  ;;  %v54_v23 = vld [vmem:[%s4209_s0 + $0x138] sm:$0xff] }
  0x41   :  { %1917 = vmatprep.subr.bf16.mxu0 %v1916_v35  ;;  %v2781_v15 = vld [vmem:[%s4210_s1 + $0x268] sm:$0xff]  ;;  %v51_v34 = vld [vmem:[%s4209_s0 + $0x120] sm:$0xff]  ;;  %v514_v47 = vadd.f32 %v513_v19, %v164_v9  ;;  %v1928_v18 = vpack.c.bf16 %v2771_v13, %v2766_v12  ;;  %v2896_v13 = vld [vmem:[%s4210_s1 + $0x3f0] sm:$0xff] }
  0x42   :  { %v84_v16 = vld [vmem:[%s4209_s0 + $0x228] sm:$0xff]  ;;  %v954_v20 = vsel %vm951_vm1, %v486_v1, %v278_v48  ;;  %v2818_v35 = vld [vmem:[%s4210_s1 + $0x360] sm:$0xff]  ;;  %v292_v48 = vadd.f32 %v35_v33, %v19_v32  ;;  %v2869_v1 = vld [vmem:[%s4210_s1 + $0x278] sm:$0xff]  ;;  %v1930_v19 = vpack.c.bf16 %v2781_v15, %v2776_v14 }
  0x43   :  { %v180_v17 = vld [vmem:[%s4209_s0 + $0x528] sm:$0xff]  ;;  %1119 = vmatmul.mubr.f32.vlgmr.msra.gmra.mrb[0].mxu1 %v954_v20  ;;  %v131_v57 = vld [vmem:[%s4209_s0 + $0x3a0] sm:$0xff]  ;;  %v308_v7 = vadd.f32 %v307_v46, %v84_v16  ;;  %v134_v27 = vld [vmem:[%s4209_s0 + $0x3b8] sm:$0xff]  ;;  %v1934_v28 = vpack.c.bf16 %v2869_v1, %v2864_v60 }
  0x44   :  { %v2804_v31 = vld [vmem:[%s4210_s1 + $0x3e8] sm:$0xff]  ;;  %1919 = vmatpush3.bf16.msra.mxu0 %v1918_v56  ;;  %1939 = vmatpush3.bf16.msra.mxu1 %v1938_v50  ;;  %v1956_v56 = vpack.c.bf16 %v2729_v62, %v2724_v61  ;;  %v67_v50 = vld [vmem:[%s4209_s0 + $0x1a0] sm:$0xff]  ;;  %v515_v8 = vadd.f32 %v514_v47, %v180_v17  ;;  %v293_v9 = vadd.f32 %v292_v48, %v51_v34  ;;  %v2901_v34 = vld [vmem:[%s4210_s1 + $0x3f8] sm:$0xff] }
  0x45   :  { %v2823_v40 = vld [vmem:[%s4210_s1 + $0x368] sm:$0xff]  ;;  %1921 = vmatprep.subr.bf16.mxu0 %v1920_v4  ;;  %v147_v58 = vld [vmem:[%s4209_s0 + $0x420] sm:$0xff]  ;;  %1941 = vmatprep.subr.bf16.mxu1 %v1940_v54  ;;  %v1960_v12 = vpack.c.bf16 %v2804_v31, %v2799_v26  ;;  %v22_v48 = vld [vmem:[%s4209_s0 + $0x38] sm:$0xff] }
  0x46   :  { %v100_v41 = vld [vmem:[%s4209_s0 + $0x2a8] sm:$0xff]  ;;  %v163_v54 = vld [vmem:[%s4209_s0 + $0x4a0] sm:$0xff]  ;;  %v500_v33 = vadd.f32 %v147_v58, %v131_v57  ;;  %v38_v57 = vld [vmem:[%s4209_s0 + $0xb8] sm:$0xff] }
  0x47   :  { %v116_v42 = vld [vmem:[%s4209_s0 + $0x328] sm:$0x1]  ;;  %v83_v16 = vld [vmem:[%s4209_s0 + $0x220] sm:$0xff]  ;;  %v331_v24 = vadd.f32 %v38_v57, %v22_v48  ;;  %v198_v37 = vld [vmem:[%s4209_s0 + $0x5b8] sm:$0xff] }
  0x48   :  { %v196_v43 = vld [vmem:[%s4209_s0 + $0x5a8] sm:$0xff]  ;;  %v310_v32 = vsel %vm244_vm0, %v116_v42, 0.0  ;;  %v115_v17 = vld [vmem:[%s4209_s0 + $0x320] sm:$0x1]  ;;  %1923 = vmatpush3.bf16.msra.mxu0 %v1922_v21  ;;  %v309_v42 = vadd.f32 %v308_v7, %v100_v41  ;;  %v294_v21 = vadd.f32 %v293_v9, %v67_v50  ;;  %1943 = vmatpush3.bf16.msra.mxu1 %v1942_v55  ;;  %v1962_v41 = vpack.c.bf16 %v2823_v40, %v2818_v35  ;;  %v214_v14 = vld [vmem:[%s4209_s0 + $0x638] sm:$0xff] }
  0x49   :  { %v228_v4 = vld [vmem:[%s4209_s0 + $0x6a8] sm:$0x1]  ;;  %v516_v46 = vadd.f32 %v515_v8, %v196_v43  ;;  %v179_v47 = vld [vmem:[%s4209_s0 + $0x520] sm:$0xff]  ;;  %1925 = vmatprep.subr.bf16.mxu0 %v1924_v49  ;;  %v501_v7 = vadd.f32 %v500_v33, %v163_v54  ;;  %1945 = vmatprep.subr.bf16.mxu1 %v1944_v2  ;;  %v1932_v55 = vpack.c.bf16 %v2848_v0, %v2843_v63  ;;  %v70_v33 = vld [vmem:[%s4209_s0 + $0x1b8] sm:$0xff]  ;;  %v297_v2 = vsel %vm244_vm0, %v115_v17, 0.0 }
  0x4a   :  { %v212_v20 = vld [vmem:[%s4209_s0 + $0x628] sm:$0xff]  ;;  %v518_v43 = vsel %vm244_vm0, %v228_v4, 0.0  ;;  %v99_v50 = vld [vmem:[%s4209_s0 + $0x2a0] sm:$0xff]  ;;  %v311_v49 = vadd.f32 %v310_v32, %v309_v42  ;;  %v295_v9 = vadd.f32 %v294_v21, %v83_v16  ;;  %v166_v32 = vld [vmem:[%s4209_s0 + $0x4b8] sm:$0xff]  ;;  %v332_v16 = vadd.f32 %v331_v24, %v54_v23 }
  0x4b   :  { %v195_v58 = vld [vmem:[%s4209_s0 + $0x5a0] sm:$0xff]  ;;  %v517_v4 = vadd.f32 %v516_v46, %v212_v20  ;;  %v502_v63 = vadd.f32 %v501_v7, %v179_v47  ;;  %v150_v20 = vld [vmem:[%s4209_s0 + $0x438] sm:$0xff]  ;;  %v801_v17 = vld [vmem:[%s4210_s1 + $0x488] sm:$0xff] }
  0x4c   :  { %v211_v8 = vld [vmem:[%s4209_s0 + $0x620] sm:$0xff]  ;;  %1927 = vmatpush3.bf16.msra.mxu0 %v1926_v53  ;;  %v312_v42 = vrot.slane %v311_v49, 4  ;;  %v296_v1 = vadd.f32 %v295_v9, %v99_v50  ;;  %v86_v46 = vld [vmem:[%s4209_s0 + $0x238] sm:$0xff]  ;;  %v539_v21 = vadd.f32 %v150_v20, %v134_v27  ;;  %1947 = vmatpush3.bf16.msra.mxu1 %v1946_v3  ;;  %v1964_v53 = vpack.c.bf16 %v2901_v34, %v2896_v13  ;;  %v21_v23 = vld [vmem:[%s4209_s0 + $0x30] sm:$0xff] }
  0x4d   :  { %v227_v54 = vld [vmem:[%s4209_s0 + $0x6a0] sm:$0x1]  ;;  %v519_v60 = vadd.f32 %v518_v43, %v517_v4  ;;  %v118_v47 = vld [vmem:[%s4209_s0 + $0x338] sm:$0x1]  ;;  %1929 = vmatprep.subr.bf16.mxu0 %v1928_v18  ;;  %v503_v48 = vadd.f32 %v502_v63, %v195_v58  ;;  %v333_v7 = vadd.f32 %v332_v16, %v70_v33  ;;  %1949 = vmatprep.subr.bf16.mxu1 %v1948_v10  ;;  %v37_v24 = vld [vmem:[%s4209_s0 + $0xb0] sm:$0xff] }
  0x4e   :  { %v2950_v0 = vld [vmem:[%s4210_s1 + $0x480] sm:$0xff]  ;;  %v505_v57 = vsel %vm244_vm0, %v227_v54, 0.0  ;;  %v102_v43 = vld [vmem:[%s4209_s0 + $0x2b8] sm:$0xff]  ;;  %v313_v29 = vadd.f32 %v312_v42, %v311_v49  ;;  %v298_v3 = vadd.f32 %v297_v2, %v296_v1  ;;  %v540_v58 = vadd.f32 %v539_v21, %v166_v32  ;;  %v133_v2 = vld [vmem:[%s4209_s0 + $0x3b0] sm:$0xff] }
  0x4f   :  { %v182_v50 = vld [vmem:[%s4209_s0 + $0x538] sm:$0xff]  ;;  %v520_v30 = vrot.slane %v519_v60, 4  ;;  %v504_v4 = vadd.f32 %v503_v48, %v211_v8  ;;  %v1968_v36 = vpack.c.bf16 %v801_v17, %v2950_v0  ;;  %v334_v10 = vadd.f32 %v333_v7, %v86_v46  ;;  %v53_v8 = vld [vmem:[%s4209_s0 + $0x130] sm:$0xff]  ;;  %v804_v13 = vld [vmem:[%s4210_s1 + $0x4a0] sm:$0xff] }
  0x50   :  { %v230_v18 = vld [vmem:[%s4209_s0 + $0x6b8] sm:$0x1]  ;;  %v336_v49 = vsel %vm244_vm0, %v118_v47, 0.0  ;;  %1931 = vmatpush3.bf16.msra.mxu0 %v1930_v19  ;;  %v314_v54 = vrot.slane %v313_v29, 2  ;;  %v299_v33 = vrot.slane %v298_v3, 4  ;;  %v541_v27 = vadd.f32 %v540_v58, %v182_v50  ;;  %1951 = vmatpush3.bf16.msra.mxu1 %v1950_v11  ;;  %v149_v0 = vld [vmem:[%s4209_s0 + $0x430] sm:$0xff] }
  0x51   :  { %v521_v9 = vadd.f32 %v520_v30, %v519_v60  ;;  %1933 = vmatprep.subr.bf16.mxu0 %v1932_v55  ;;  %v506_v63 = vadd.f32 %v505_v57, %v504_v4  ;;  %v335_v15 = vadd.f32 %v334_v10, %v102_v43  ;;  %v544_v19 = vsel %vm244_vm0, %v230_v18, 0.0  ;;  %1953 = vmatprep.subr.bf16.mxu1 %v1952_v22  ;;  %v69_v32 = vld [vmem:[%s4209_s0 + $0x1b0] sm:$0xff]  ;;  %v767_v10 = vld [vmem:[%s4210_s1 + $0x378] sm:$0xff]  ;;  %v805_v34 = vld [vmem:[%s4210_s1 + $0x4a8] sm:$0xff] }
  0x52   :  { %v318_v20 = vadd.f32 %v37_v24, %v21_v23  ;;  %v315_v38 = vadd.f32 %v314_v54, %v313_v29  ;;  %v300_v11 = vadd.f32 %v299_v33, %v298_v3  ;;  %v542_v55 = vadd.f32 %v541_v27, %v198_v37  ;;  %v165_v16 = vld [vmem:[%s4209_s0 + $0x4b0] sm:$0xff]  ;;  %v785_v33 = vld [vmem:[%s4210_s1 + $0x408] sm:$0xff]  ;;  %v787_v35 = vld [vmem:[%s4210_s1 + $0x418] sm:$0xff] }
  0x53   :  { %v522_v39 = vrot.slane %v521_v9, 2  ;;  %v507_v42 = vrot.slane %v506_v63, 4  ;;  %v337_v60 = vadd.f32 %v336_v49, %v335_v15  ;;  %v526_v17 = vadd.f32 %v149_v0, %v133_v2  ;;  %v85_v47 = vld [vmem:[%s4209_s0 + $0x230] sm:$0xff]  ;;  %v832_v2 = vld [vmem:[%s4210_s1 + $0x580] sm:$0xff] }
  0x54   :  { %v319_v1 = vadd.f32 %v318_v20, %v53_v8  ;;  %1935 = vmatpush3.bf16.msra.mxu0 %v1934_v28  ;;  %v316_v46 = vrot.slane %v315_v38, 1  ;;  %v301_v45 = vrot.slane %v300_v11, 2  ;;  %v543_v22 = vadd.f32 %v542_v55, %v214_v14  ;;  %v181_v21 = vld [vmem:[%s4209_s0 + $0x530] sm:$0xff]  ;;  %1955 = vmatpush3.bf16.msra.mxu1 %v1954_v25 }
  0x55   :  { %v523_v44 = vadd.f32 %v522_v39, %v521_v9  ;;  %v508_v48 = vadd.f32 %v507_v42, %v506_v63  ;;  %1969 = vmatprep.subr.bf16.mxu0 %v1968_v36  ;;  %v338_v57 = vrot.slane %v337_v60, 4  ;;  %v117_v28 = vld [vmem:[%s4209_s0 + $0x330] sm:$0x1]  ;;  %v527_v50 = vadd.f32 %v526_v17, %v165_v16  ;;  %1957 = vmatprep.subr.bf16.mxu1 %v1956_v56  ;;  %v784_v9 = vld [vmem:[%s4210_s1 + $0x400] sm:$0xff] }
  0x56   :  { %v320_v43 = vadd.f32 %v319_v1, %v69_v32  ;;  %v317_v7 = vadd.f32 %v316_v46, %v315_v38  ;;  %v302_v30 = vadd.f32 %v301_v45, %v300_v11  ;;  %v545_v3 = vadd.f32 %v544_v19, %v543_v22  ;;  %v101_v51 = vld [vmem:[%s4209_s0 + $0x2b0] sm:$0xff]  ;;  %v833_v19 = vld [vmem:[%s4210_s1 + $0x588] sm:$0xff] }
  0x57   :  { %v524_v29 = vrot.slane %v523_v44, 1  ;;  %v197_v52 = vld [vmem:[%s4209_s0 + $0x5b0] sm:$0xff]  ;;  %v509_v25 = vrot.slane %v508_v48, 2  ;;  %v339_v18 = vadd.f32 %v338_v57, %v337_v60  ;;  %v528_v62 = vadd.f32 %v527_v50, %v181_v21  ;;  %v3111_v57 = vld [vmem:[%s4210_s1 + $0x508] sm:$0xff] }
  0x58   :  { %v229_v58 = vld [vmem:[%s4209_s0 + $0x6b0] sm:$0x1]  ;;  %v321_v61 = vadd.f32 %v320_v43, %v85_v47  ;;  %v303_v24 = vrot.slane %v302_v30, 1  ;;  %v546_v4 = vrot.slane %v545_v3, 4  ;;  %v323_v37 = vsel %vm244_vm0, %v117_v28, 0.0  ;;  %1959 = vmatpush3.bf16.msra.mxu1 %v1958_v59  ;;  %v3121_v43 = vld [vmem:[%s4210_s1 + $0x598] sm:$0xff] }
  0x59   :  { %v766_v56 = vld [vmem:[%s4210_s1 + $0x370] sm:$0xff]  ;;  %v525_v23 = vadd.f32 %v524_v29, %v523_v44  ;;  %v510_v49 = vadd.f32 %v509_v25, %v508_v48  ;;  %v340_v54 = vrot.slane %v339_v18, 2  ;;  %v529_v8 = vadd.f32 %v528_v62, %v197_v52  ;;  %1961 = vmatprep.subr.bf16.mxu1 %v1960_v12  ;;  %v803_v12 = vld [vmem:[%s4210_s1 + $0x498] sm:$0xff]  ;;  %v3106_v48 = vld [vmem:[%s4210_s1 + $0x500] sm:$0xff] }
  0x5a   :  { %v213_v36 = vld [vmem:[%s4209_s0 + $0x630] sm:$0xff]  ;;  %v322_v27 = vadd.f32 %v321_v61, %v101_v51  ;;  %v304_v6 = vadd.f32 %v303_v24, %v302_v30  ;;  %v547_v59 = vadd.f32 %v546_v4, %v545_v3  ;;  %v531_v63 = vsel %vm244_vm0, %v229_v58, 0.0  ;;  %v789_v29 = vld [vmem:[%s4210_s1 + $0x428] sm:$0xff]  ;;  %v3137_v52 = vld [vmem:[%s4210_s1 + $0x518] sm:$0xff] }
  0x5b   :  { %v957_v5 = vsel %vm951_vm1, %v525_v23, %v317_v7  ;;  %v511_v14 = vrot.slane %v510_v49, 1  ;;  %v341_v15 = vadd.f32 %v340_v54, %v339_v18  ;;  %v530_v26 = vadd.f32 %v529_v8, %v213_v36  ;;  %v802_v31 = vld [vmem:[%s4210_s1 + $0x490] sm:$0xff]  ;;  %v788_v7 = vld [vmem:[%s4210_s1 + $0x420] sm:$0xff]  ;;  %v3147_v18 = vld [vmem:[%s4210_s1 + $0x5a8] sm:$0xff] }
  0x5c   :  { %1188 = vmatprep.mubr.f32.mxu0 %v957_v5  ;;  %v324_v0 = vadd.f32 %v323_v37, %v322_v27  ;;  %v1966_v20 = vpack.c.bf16 %v767_v10, %v766_v56  ;;  %v548_v38 = vrot.slane %v547_v59, 2  ;;  %v1970_v39 = vpack.c.bf16 %v785_v33, %v784_v9  ;;  %1963 = vmatpush3.bf16.msra.mxu1 %v1962_v41  ;;  %v786_v17 = vld [vmem:[%s4210_s1 + $0x410] sm:$0xff]  ;;  %v3142_v25 = vld [vmem:[%s4210_s1 + $0x5a0] sm:$0xff]  ;;  %v3157_v61 = vld [vmem:[%s4210_s1 + $0x528] sm:$0xff] }
  0x5d   :  { %v512_v11 = vadd.f32 %v511_v14, %v510_v49  ;;  %v342_v55 = vrot.slane %v341_v15, 1  ;;  %v532_v16 = vadd.f32 %v531_v63, %v530_v26  ;;  %1965 = vmatprep.subr.bf16.mxu1 %v1964_v53  ;;  %v2000_v60 = vpack.c.bf16 %v833_v19, %v832_v2  ;;  %v3116_v28 = vld [vmem:[%s4210_s1 + $0x590] sm:$0xff]  ;;  %v3152_v58 = vld [vmem:[%s4210_s1 + $0x520] sm:$0xff]  ;;  %v807_v56 = vld [vmem:[%s4210_s1 + $0x4b8] sm:$0xff] }
  0x5e   :  { %v325_v32 = vrot.slane %v324_v0, 4  ;;  %v549_v42 = vadd.f32 %v548_v38, %v547_v59  ;;  %v1972_v1 = vpack.c.bf16 %v803_v12, %v802_v31  ;;  %v1974_v47 = vpack.c.bf16 %v787_v35, %v786_v17  ;;  %v3132_v51 = vld [vmem:[%s4210_s1 + $0x510] sm:$0xff]  ;;  %v3174_v4 = vld [vmem:[%s4210_s1 + $0x438] sm:$0xff]  ;;  %v3199_v27 = vld [vmem:[%s4210_s1 + $0x4c0] sm:$0xff] }
  0x5f   :  { %v956_v40 = vsel %vm951_vm1, %v512_v11, %v304_v6  ;;  %v533_v46 = vrot.slane %v532_v16, 4  ;;  %v343_v53 = vadd.f32 %v342_v55, %v341_v15  ;;  %v1976_v50 = vpack.c.bf16 %v805_v34, %v804_v13  ;;  %v806_v62 = vld [vmem:[%s4210_s1 + $0x4b0] sm:$0xff]  ;;  %v3184_v37 = vld [vmem:[%s4210_s1 + $0x5b8] sm:$0xff]  ;;  %v3204_v8 = vld [vmem:[%s4210_s1 + $0x4c8] sm:$0xff] }
  0x60   :  { %v326_v41 = vadd.f32 %v325_v32, %v324_v0  ;;  %1189 = vmatmul.mubr.f32.vlgmr.msra.gmra.mrb[2].mxu0 %v956_v40  ;;  %v550_v44 = vrot.slane %v549_v42, 1  ;;  %1967 = vmatpush3.bf16.msra.mxu1 %v1966_v20  ;;  %v3169_v24 = vld [vmem:[%s4210_s1 + $0x430] sm:$0xff]  ;;  %v3194_v49 = vld [vmem:[%s4210_s1 + $0x538] sm:$0xff]  ;;  %v1978_v33 = vpack.c.bf16 %v789_v29, %v788_v7  ;;  %v3209_v5 = vld [vmem:[%s4210_s1 + $0x440] sm:$0xff]  ;;  %v1980_v59 = vpack.c.bf16 %v807_v56, %v806_v62 }
  0x61   :  { %1971 = vmatpush3.bf16.msra.mxu0 %v1970_v39  ;;  %v534_v22 = vadd.f32 %v533_v46, %v532_v16  ;;  %2001 = vmatprep.subr.bf16.mxu1 %v2000_v60  ;;  %v3179_v36 = vld [vmem:[%s4210_s1 + $0x5b0] sm:$0xff]  ;;  %v3214_v6 = vld [vmem:[%s4210_s1 + $0x448] sm:$0xff]  ;;  %v3219_v2 = vld [vmem:[%s4210_s1 + $0x5c0] sm:$0xff]  ;;  %v2002_v38 = vpack.c.bf16 %v3111_v57, %v3106_v48  ;;  %v2004_v39 = vpack.c.bf16 %v3121_v43, %v3116_v28 }
  0x62   :  { %v327_v45 = vrot.slane %v326_v41, 2  ;;  %v551_v21 = vadd.f32 %v550_v44, %v549_v42  ;;  %1973 = vmatprep.subr.bf16.mxu0 %v1972_v1  ;;  %v3189_v10 = vld [vmem:[%s4210_s1 + $0x530] sm:$0xff]  ;;  %v3224_v63 = vld [vmem:[%s4210_s1 + $0x5c8] sm:$0xff]  ;;  %v3229_v14 = vld [vmem:[%s4210_s1 + $0x540] sm:$0xff]  ;;  %v2006_v16 = vpack.c.bf16 %v3137_v52, %v3132_v51  ;;  %v2008_v42 = vpack.c.bf16 %v3147_v18, %v3142_v25 }
  0x63   :  { %v535_v3 = vrot.slane %v534_v22, 2  ;;  %v3234_v15 = vld [vmem:[%s4210_s1 + $0x548] sm:$0xff]  ;;  %v3239_v19 = vld [vmem:[%s4210_s1 + $0x4d0] sm:$0xff]  ;;  %v3244_v0 = vld [vmem:[%s4210_s1 + $0x4d8] sm:$0xff]  ;;  %v2010_v60 = vpack.c.bf16 %v3157_v61, %v3152_v58  ;;  %v1982_v44 = vpack.c.bf16 %v3174_v4, %v3169_v24  ;;  %v1984_v57 = vpack.c.bf16 %v3204_v8, %v3199_v27 }
  0x64   :  { %v328_v30 = vadd.f32 %v327_v45, %v326_v41  ;;  %v959_v23 = vsel %vm951_vm1, %v551_v21, %v343_v53  ;;  %v24_v26 = vld [vmem:[%s4209_s0 + $0x48] sm:$0xff]  ;;  %v3259_v11 = vld [vmem:[%s4210_s1 + $0x450] sm:$0xff]  ;;  %v3264_v55 = vld [vmem:[%s4210_s1 + $0x458] sm:$0xff]  ;;  %v2012_v45 = vpack.c.bf16 %v3184_v37, %v3179_v36  ;;  %v1986_v28 = vpack.c.bf16 %v3214_v6, %v3209_v5 }
  0x65   :  { %1258 = vmatprep.mubr.f32.mxu1 %v959_v23  ;;  %v536_v9 = vadd.f32 %v535_v3, %v534_v22  ;;  %1975 = vmatpush3.bf16.msra.mxu0 %v1974_v47  ;;  %v40_v31 = vld [vmem:[%s4209_s0 + $0xc8] sm:$0xff]  ;;  %v3278_v1 = vld [vmem:[%s4210_s1 + $0x5d0] sm:$0xff]  ;;  %v3283_v17 = vld [vmem:[%s4210_s1 + $0x5d8] sm:$0xff]  ;;  %v2014_v22 = vpack.c.bf16 %v3194_v49, %v3189_v10  ;;  %v2016_v24 = vpack.c.bf16 %v3224_v63, %v3219_v2 }
  0x66   :  { %v329_v54 = vrot.slane %v328_v30, 1  ;;  %1977 = vmatprep.subr.bf16.mxu0 %v1976_v50  ;;  %v56_v32 = vld [vmem:[%s4209_s0 + $0x148] sm:$0xff]  ;;  %v3288_v35 = vld [vmem:[%s4210_s1 + $0x550] sm:$0xff]  ;;  %v3293_v40 = vld [vmem:[%s4210_s1 + $0x558] sm:$0xff]  ;;  %v357_v34 = vadd.f32 %v40_v31, %v24_v26  ;;  %v1990_v6 = vpack.c.bf16 %v3264_v55, %v3259_v11 }
  0x67   :  { %v537_v20 = vrot.slane %v536_v9, 1  ;;  %v3298_v41 = vld [vmem:[%s4210_s1 + $0x4e0] sm:$0xff]  ;;  %v3303_v46 = vld [vmem:[%s4210_s1 + $0x4e8] sm:$0xff]  ;;  %v58_v51 = vld [vmem:[%s4209_s0 + $0x158] sm:$0xff] }
  0x68   :  { %v330_v12 = vadd.f32 %v329_v54, %v328_v30  ;;  %v136_v13 = vld [vmem:[%s4209_s0 + $0x3c8] sm:$0xff]  ;;  %v3330_v43 = vld [vmem:[%s4210_s1 + $0x460] sm:$0xff]  ;;  %v358_v62 = vadd.f32 %v357_v34, %v56_v32  ;;  %v1988_v54 = vpack.c.bf16 %v3244_v0, %v3239_v19  ;;  %v3389_v19 = vld [vmem:[%s4210_s1 + $0x4f8] sm:$0xff] }
  0x69   :  { %v538_v53 = vadd.f32 %v537_v20, %v536_v9  ;;  %1979 = vmatpush3.bf16.msra.mxu0 %v1978_v33  ;;  %v72_v47 = vld [vmem:[%s4209_s0 + $0x1c8] sm:$0xff]  ;;  %v3340_v7 = vld [vmem:[%s4210_s1 + $0x5e0] sm:$0xff]  ;;  %v138_v25 = vld [vmem:[%s4209_s0 + $0x3d8] sm:$0xff] }
  0x6a   :  { %v152_v21 = vld [vmem:[%s4209_s0 + $0x448] sm:$0xff]  ;;  %1981 = vmatprep.subr.bf16.mxu0 %v1980_v59  ;;  %v3363_v9 = vld [vmem:[%s4210_s1 + $0x560] sm:$0xff]  ;;  %v3384_v59 = vld [vmem:[%s4210_s1 + $0x4f0] sm:$0xff] }
  0x6b   :  { %v168_v48 = vld [vmem:[%s4209_s0 + $0x4c8] sm:$0xff]  ;;  %v565_v56 = vadd.f32 %v152_v21, %v136_v13  ;;  %v958_v23 = vsel %vm951_vm1, %v538_v53, %v330_v12  ;;  %v23_v27 = vld [vmem:[%s4209_s0 + $0x40] sm:$0xff]  ;;  %v359_v12 = vadd.f32 %v358_v62, %v72_v47  ;;  %v1992_v53 = vpack.c.bf16 %v3303_v46, %v3298_v41  ;;  %v41_v36 = vld [vmem:[%s4209_s0 + $0xd0] sm:$0xff] }
  0x6c   :  { %v3335_v50 = vld [vmem:[%s4210_s1 + $0x468] sm:$0xff]  ;;  %v39_v8 = vld [vmem:[%s4209_s0 + $0xc0] sm:$0xff]  ;;  %1259 = vmatmul.mubr.f32.vlgmr.msra.gmra.mrb[2].mxu1 %v958_v23  ;;  %v202_v46 = vld [vmem:[%s4209_s0 + $0x5d8] sm:$0xff] }
  0x6d   :  { %v3345_v29 = vld [vmem:[%s4210_s1 + $0x5e8] sm:$0xff]  ;;  %v55_v5 = vld [vmem:[%s4209_s0 + $0x140] sm:$0xff]  ;;  %v566_v20 = vadd.f32 %v565_v56, %v168_v48  ;;  %v344_v32 = vadd.f32 %v39_v8, %v23_v27  ;;  %2003 = vmatpush3.bf16.msra.mxu1 %v2002_v38  ;;  %1983 = vmatpush3.bf16.msra.mxu0 %v1982_v44  ;;  %v3418_v44 = vld [vmem:[%s4210_s1 + $0x470] sm:$0xff]  ;;  %v1994_v27 = vpack.c.bf16 %v3335_v50, %v3330_v43 }
  0x6e   :  { %v88_v30 = vld [vmem:[%s4209_s0 + $0x248] sm:$0xff]  ;;  %v71_v21 = vld [vmem:[%s4209_s0 + $0x1c0] sm:$0xff]  ;;  %2005 = vmatprep.subr.bf16.mxu1 %v2004_v39  ;;  %1985 = vmatprep.subr.bf16.mxu0 %v1984_v57  ;;  %v3423_v48 = vld [vmem:[%s4210_s1 + $0x478] sm:$0xff] }
  0x6f   :  { %v184_v3 = vld [vmem:[%s4209_s0 + $0x548] sm:$0xff]  ;;  %v135_v47 = vld [vmem:[%s4209_s0 + $0x3c0] sm:$0xff]  ;;  %v360_v56 = vadd.f32 %v359_v12, %v88_v30  ;;  %v345_v57 = vadd.f32 %v344_v32, %v55_v5  ;;  %v42_v12 = vld [vmem:[%s4209_s0 + $0xd8] sm:$0xff]  ;;  %v1998_v18 = vpack.c.bf16 %v3423_v48, %v3418_v44 }
  0x70   :  { %v3368_v33 = vld [vmem:[%s4210_s1 + $0x568] sm:$0xff]  ;;  %v151_v38 = vld [vmem:[%s4209_s0 + $0x440] sm:$0xff]  ;;  %v567_v23 = vadd.f32 %v566_v20, %v184_v3  ;;  %v3450_v20 = vld [vmem:[%s4210_s1 + $0x5f0] sm:$0xff] }
  0x71   :  { %v104_v0 = vld [vmem:[%s4209_s0 + $0x2c8] sm:$0xff]  ;;  %v167_v39 = vld [vmem:[%s4209_s0 + $0x4c0] sm:$0xff]  ;;  %v552_v5 = vadd.f32 %v151_v38, %v135_v47  ;;  %v346_v47 = vadd.f32 %v345_v57, %v71_v21  ;;  %v26_v38 = vld [vmem:[%s4209_s0 + $0x58] sm:$0xff]  ;;  %2007 = vmatpush3.bf16.msra.mxu1 %v2006_v16  ;;  %1987 = vmatpush3.bf16.msra.mxu0 %v1986_v28 }
  0x72   :  { %v120_v26 = vld [vmem:[%s4209_s0 + $0x348] sm:$0x1]  ;;  %v87_v30 = vld [vmem:[%s4209_s0 + $0x240] sm:$0xff]  ;;  %v361_v32 = vadd.f32 %v360_v56, %v104_v0  ;;  %v1996_v0 = vpack.c.bf16 %v3389_v19, %v3384_v59  ;;  %v383_v52 = vadd.f32 %v42_v12, %v26_v38  ;;  %2009 = vmatprep.subr.bf16.mxu1 %v2008_v42  ;;  %1989 = vmatprep.subr.bf16.mxu0 %v1988_v54  ;;  %v122_v38 = vld [vmem:[%s4209_s0 + $0x358] sm:$0x1] }
  0x73   :  { %v200_v31 = vld [vmem:[%s4209_s0 + $0x5c8] sm:$0xff]  ;;  %v362_v13 = vsel %vm244_vm0, %v120_v26, 0.0  ;;  %v119_v3 = vld [vmem:[%s4209_s0 + $0x340] sm:$0x1]  ;;  %v3455_v26 = vld [vmem:[%s4210_s1 + $0x5f8] sm:$0xff]  ;;  %v347_v57 = vadd.f32 %v346_v47, %v87_v30 }
  0x74   :  { %v232_v62 = vld [vmem:[%s4209_s0 + $0x6c8] sm:$0x1]  ;;  %v568_v8 = vadd.f32 %v567_v23, %v200_v31  ;;  %v183_v4 = vld [vmem:[%s4209_s0 + $0x540] sm:$0xff]  ;;  %v553_v23 = vadd.f32 %v552_v5, %v167_v39  ;;  %v363_v16 = vadd.f32 %v362_v13, %v361_v32  ;;  %v74_v5 = vld [vmem:[%s4209_s0 + $0x1d8] sm:$0xff]  ;;  %v349_v42 = vsel %vm244_vm0, %v119_v3, 0.0 }
  0x75   :  { %v216_v34 = vld [vmem:[%s4209_s0 + $0x648] sm:$0xff]  ;;  %v570_v31 = vsel %vm244_vm0, %v232_v62, 0.0  ;;  %v103_v21 = vld [vmem:[%s4209_s0 + $0x2c0] sm:$0xff]  ;;  %v384_v30 = vadd.f32 %v383_v52, %v58_v51  ;;  %v90_v3 = vld [vmem:[%s4209_s0 + $0x258] sm:$0xff]  ;;  %2011 = vmatpush3.bf16.msra.mxu1 %v2010_v60  ;;  %1991 = vmatpush3.bf16.msra.mxu0 %v1990_v6 }
  0x76   :  { %v199_v56 = vld [vmem:[%s4209_s0 + $0x5c0] sm:$0xff]  ;;  %v569_v28 = vadd.f32 %v568_v8, %v216_v34  ;;  %v554_v54 = vadd.f32 %v553_v23, %v183_v4  ;;  %v154_v34 = vld [vmem:[%s4209_s0 + $0x458] sm:$0xff]  ;;  %v364_v12 = vrot.slane %v363_v16, 4  ;;  %v348_v47 = vadd.f32 %v347_v57, %v103_v21  ;;  %v3513_v4 = vld [vmem:[%s4210_s1 + $0x688] sm:$0xff]  ;;  %2013 = vmatprep.subr.bf16.mxu1 %v2012_v45  ;;  %1993 = vmatprep.subr.bf16.mxu0 %v1992_v53 }
  0x77   :  { %v215_v62 = vld [vmem:[%s4209_s0 + $0x640] sm:$0xff]  ;;  %v170_v8 = vld [vmem:[%s4209_s0 + $0x4d8] sm:$0xff]  ;;  %v591_v23 = vadd.f32 %v154_v34, %v138_v25  ;;  %v385_v58 = vadd.f32 %v384_v30, %v74_v5  ;;  %v388_v53 = vsel %vm244_vm0, %v122_v38, 0.0  ;;  %v57_v25 = vld [vmem:[%s4209_s0 + $0x150] sm:$0xff] }
  0x78   :  { %v231_v39 = vld [vmem:[%s4209_s0 + $0x6c0] sm:$0x1]  ;;  %v571_v32 = vadd.f32 %v570_v31, %v569_v28  ;;  %v2028_v31 = vpack.c.bf16 %v3455_v26, %v3450_v20  ;;  %v555_v21 = vadd.f32 %v554_v54, %v199_v56  ;;  %v106_v52 = vld [vmem:[%s4209_s0 + $0x2d8] sm:$0xff]  ;;  %v365_v61 = vadd.f32 %v364_v12, %v363_v16  ;;  %v25_v56 = vld [vmem:[%s4209_s0 + $0x50] sm:$0xff] }
  0x79   :  { %v3502_v13 = vld [vmem:[%s4210_s1 + $0x680] sm:$0xff]  ;;  %v557_v51 = vsel %vm244_vm0, %v231_v39, 0.0  ;;  %v186_v28 = vld [vmem:[%s4209_s0 + $0x558] sm:$0xff]  ;;  %v350_v55 = vadd.f32 %v349_v42, %v348_v47  ;;  %v592_v6 = vadd.f32 %v591_v23, %v170_v8  ;;  %v386_v45 = vadd.f32 %v385_v58, %v90_v3  ;;  %2015 = vmatpush3.bf16.msra.mxu1 %v2014_v22  ;;  %1995 = vmatpush3.bf16.msra.mxu0 %v1994_v27  ;;  %v153_v8 = vld [vmem:[%s4209_s0 + $0x450] sm:$0xff] }
  0x7a   :  { %v572_v11 = vrot.slane %v571_v32, 4  ;;  %v234_v60 = vld [vmem:[%s4209_s0 + $0x6d8] sm:$0x1]  ;;  %v556_v37 = vadd.f32 %v555_v21, %v215_v62  ;;  %v2032_v41 = vpack.c.bf16 %v3513_v4, %v3502_v13  ;;  %v366_v16 = vrot.slane %v365_v61, 2  ;;  %v137_v62 = vld [vmem:[%s4209_s0 + $0x3d0] sm:$0xff]  ;;  %2017 = vmatprep.subr.bf16.mxu1 %v2016_v24  ;;  %1997 = vmatprep.subr.bf16.mxu0 %v1996_v0  ;;  %v868_v20 = vld [vmem:[%s4210_s1 + $0x6a0] sm:$0xff] }
  0x7b   :  { %v351_v57 = vrot.slane %v350_v55, 4  ;;  %v593_v5 = vadd.f32 %v592_v6, %v186_v28  ;;  %v218_v54 = vld [vmem:[%s4209_s0 + $0x658] sm:$0xff]  ;;  %v387_v13 = vadd.f32 %v386_v45, %v106_v52  ;;  %v596_v34 = vsel %vm244_vm0, %v234_v60, 0.0  ;;  %v73_v50 = vld [vmem:[%s4209_s0 + $0x1d0] sm:$0xff]  ;;  %v869_v26 = vld [vmem:[%s4210_s1 + $0x6a8] sm:$0xff] }
  0x7c   :  { %v573_v39 = vadd.f32 %v572_v11, %v571_v32  ;;  %v558_v42 = vadd.f32 %v557_v51, %v556_v37  ;;  %v370_v30 = vadd.f32 %v41_v36, %v25_v56  ;;  %v367_v10 = vadd.f32 %v366_v16, %v365_v61  ;;  %v169_v27 = vld [vmem:[%s4209_s0 + $0x4d0] sm:$0xff]  ;;  %v831_v45 = vld [vmem:[%s4210_s1 + $0x578] sm:$0xff] }
  0x7d   :  { %v352_v22 = vadd.f32 %v351_v57, %v350_v55  ;;  %v594_v43 = vadd.f32 %v593_v5, %v202_v46  ;;  %v389_v32 = vadd.f32 %v388_v53, %v387_v13  ;;  %v578_v63 = vadd.f32 %v153_v8, %v137_v62  ;;  %v89_v0 = vld [vmem:[%s4209_s0 + $0x250] sm:$0xff]  ;;  %1999 = vmatpush3.bf16.msra.mxu0 %v1998_v18  ;;  %v849_v57 = vld [vmem:[%s4210_s1 + $0x608] sm:$0xff] }
  0x7e   :  { %v574_v49 = vrot.slane %v573_v39, 2  ;;  %v559_v12 = vrot.slane %v558_v42, 4  ;;  %v371_v2 = vadd.f32 %v370_v30, %v57_v25  ;;  %v368_v24 = vrot.slane %v367_v10, 1  ;;  %v185_v4 = vld [vmem:[%s4209_s0 + $0x550] sm:$0xff]  ;;  %2033 = vmatprep.subr.bf16.mxu0 %v2032_v41  ;;  %v897_v30 = vld [vmem:[%s4210_s1 + $0x788] sm:$0xff] }
  0x7f   :  { %v353_v59 = vrot.slane %v352_v22, 2  ;;  %v595_v19 = vadd.f32 %v594_v43, %v218_v54  ;;  %v4213_v3 = vpack.c.bf16 %v3234_v15, %v3229_v14  ;;  %v390_v23 = vrot.slane %v389_v32, 4  ;;  %v121_v21 = vld [vmem:[%s4209_s0 + $0x350] sm:$0x1]  ;;  %v896_v54 = vld [vmem:[%s4210_s1 + $0x780] sm:$0xff] }
  0x80   :  { %v575_v47 = vadd.f32 %v574_v49, %v573_v39  ;;  %v560_v38 = vadd.f32 %v559_v12, %v558_v42  ;;  %v372_v51 = vadd.f32 %v371_v2, %v73_v50  ;;  %v579_v52 = vadd.f32 %v578_v63, %v169_v27  ;;  %v105_v44 = vld [vmem:[%s4209_s0 + $0x2d0] sm:$0xff]  ;;  %v848_v39 = vld [vmem:[%s4210_s1 + $0x600] sm:$0xff]  ;;  %v867_v49 = vld [vmem:[%s4210_s1 + $0x698] sm:$0xff] }
  0x81   :  { %2019 = vmatpush3.bf16.msra.mxu1 %v4213_v3  ;;  %v4214_v28 = vpack.c.bf16 %v3283_v17, %v3278_v1  ;;  %v369_v58 = vadd.f32 %v368_v24, %v367_v10  ;;  %v354_v14 = vadd.f32 %v353_v59, %v352_v22  ;;  %v597_v15 = vadd.f32 %v596_v34, %v595_v19  ;;  %v201_v48 = vld [vmem:[%s4209_s0 + $0x5d0] sm:$0xff] }
  0x82   :  { %v576_v61 = vrot.slane %v575_v47, 1  ;;  %v561_v18 = vrot.slane %v560_v38, 2  ;;  %v391_v11 = vadd.f32 %v390_v23, %v389_v32  ;;  %v233_v1 = vld [vmem:[%s4209_s0 + $0x6d0] sm:$0x1]  ;;  %v373_v17 = vadd.f32 %v372_v51, %v89_v0  ;;  %v3678_v51 = vld [vmem:[%s4210_s1 + $0x708] sm:$0xff] }
  0x83   :  { %2021 = vmatprep.subr.bf16.mxu1 %v4214_v28  ;;  %v580_v55 = vadd.f32 %v579_v52, %v185_v4  ;;  %v830_v60 = vld [vmem:[%s4210_s1 + $0x570] sm:$0xff]  ;;  %v355_v56 = vrot.slane %v354_v14, 1  ;;  %v598_v36 = vrot.slane %v597_v15, 4  ;;  %v375_v41 = vsel %vm244_vm0, %v121_v21, 0.0  ;;  %v3673_v21 = vld [vmem:[%s4210_s1 + $0x700] sm:$0xff] }
  0x84   :  { %v577_v6 = vadd.f32 %v576_v61, %v575_v47  ;;  %v217_v37 = vld [vmem:[%s4209_s0 + $0x650] sm:$0xff]  ;;  %v4215_v46 = vpack.c.bf16 %v3293_v40, %v3288_v35  ;;  %v562_v53 = vadd.f32 %v561_v18, %v560_v38  ;;  %v392_v16 = vrot.slane %v391_v11, 2  ;;  %v3688_v61 = vld [vmem:[%s4210_s1 + $0x798] sm:$0xff]  ;;  %v853_v18 = vld [vmem:[%s4210_s1 + $0x628] sm:$0xff] }
  0x85   :  { %v374_v5 = vadd.f32 %v373_v17, %v105_v44  ;;  %v581_v25 = vadd.f32 %v580_v55, %v201_v48  ;;  %v4216_v35 = vpack.c.bf16 %v3345_v29, %v3340_v7  ;;  %v356_v62 = vadd.f32 %v355_v56, %v354_v14  ;;  %v866_v29 = vld [vmem:[%s4210_s1 + $0x690] sm:$0xff]  ;;  %v852_v48 = vld [vmem:[%s4210_s1 + $0x620] sm:$0xff]  ;;  %v3729_v56 = vld [vmem:[%s4210_s1 + $0x728] sm:$0xff] }
  0x86   :  { %2023 = vmatpush3.bf16.msra.mxu1 %v4215_v46  ;;  %v961_v40 = vsel %vm951_vm1, %v577_v6, %v369_v58  ;;  %v599_v42 = vadd.f32 %v598_v36, %v597_v15  ;;  %v583_v13 = vsel %vm244_vm0, %v233_v1, 0.0  ;;  %v563_v34 = vrot.slane %v562_v53, 1  ;;  %v850_v19 = vld [vmem:[%s4210_s1 + $0x610] sm:$0xff]  ;;  %v3698_v15 = vld [vmem:[%s4210_s1 + $0x718] sm:$0xff]  ;;  %v3714_v55 = vld [vmem:[%s4210_s1 + $0x7a0] sm:$0xff] }
  0x87   :  { %2025 = vmatprep.subr.bf16.mxu1 %v4216_v35  ;;  %1328 = vmatprep.mubr.f32.mxu0 %v961_v40  ;;  %v393_v8 = vadd.f32 %v392_v16, %v391_v11  ;;  %v376_v10 = vadd.f32 %v375_v41, %v374_v5  ;;  %v582_v7 = vadd.f32 %v581_v25, %v217_v37  ;;  %v3683_v58 = vld [vmem:[%s4210_s1 + $0x790] sm:$0xff]  ;;  %v3724_v6 = vld [vmem:[%s4210_s1 + $0x720] sm:$0xff]  ;;  %v871_v36 = vld [vmem:[%s4210_s1 + $0x6b8] sm:$0xff] }
  0x88   :  { %v2030_v22 = vpack.c.bf16 %v831_v45, %v830_v60  ;;  %v600_v43 = vrot.slane %v599_v42, 2  ;;  %v2034_v50 = vpack.c.bf16 %v849_v57, %v848_v39  ;;  %v4217_v27 = vpack.c.bf16 %v3368_v33, %v3363_v9  ;;  %v851_v9 = vld [vmem:[%s4210_s1 + $0x618] sm:$0xff]  ;;  %v3693_v14 = vld [vmem:[%s4210_s1 + $0x710] sm:$0xff]  ;;  %v3719_v60 = vld [vmem:[%s4210_s1 + $0x7a8] sm:$0xff] }
  0x89   :  { %v564_v12 = vadd.f32 %v563_v34, %v562_v53  ;;  %v394_v32 = vrot.slane %v393_v8, 1  ;;  %v377_v2 = vrot.slane %v376_v10, 4  ;;  %v584_v63 = vadd.f32 %v583_v13, %v582_v7  ;;  %v3709_v11 = vld [vmem:[%s4210_s1 + $0x6b0] sm:$0xff]  ;;  %v3742_v41 = vld [vmem:[%s4210_s1 + $0x638] sm:$0xff]  ;;  %v3768_v57 = vld [vmem:[%s4210_s1 + $0x6c0] sm:$0xff] }
  0x8a   :  { %2027 = vmatpush3.bf16.msra.mxu1 %v4217_v27  ;;  %v601_v24 = vadd.f32 %v600_v43, %v599_v42  ;;  %v2064_v47 = vpack.c.bf16 %v897_v30, %v896_v54  ;;  %v2036_v59 = vpack.c.bf16 %v867_v49, %v866_v29  ;;  %v2038_v52 = vpack.c.bf16 %v851_v9, %v850_v19  ;;  %v3737_v37 = vld [vmem:[%s4210_s1 + $0x630] sm:$0xff]  ;;  %v3753_v53 = vld [vmem:[%s4210_s1 + $0x7b8] sm:$0xff]  ;;  %v3773_v5 = vld [vmem:[%s4210_s1 + $0x6c8] sm:$0xff] }
  0x8b   :  { %2029 = vmatprep.subr.bf16.mxu1 %v2028_v31  ;;  %v960_v33 = vsel %vm951_vm1, %v564_v12, %v356_v62  ;;  %v378_v0 = vadd.f32 %v377_v2, %v376_v10  ;;  %v585_v4 = vrot.slane %v584_v63, 4  ;;  %v395_v31 = vadd.f32 %v394_v32, %v393_v8  ;;  %v3748_v45 = vld [vmem:[%s4210_s1 + $0x7b0] sm:$0xff]  ;;  %v3763_v39 = vld [vmem:[%s4210_s1 + $0x738] sm:$0xff]  ;;  %v3778_v62 = vld [vmem:[%s4210_s1 + $0x640] sm:$0xff] }
  0x8c   :  { %1329 = vmatmul.mubr.f32.vlgmr.msra.gmra.mrb[4].mxu0 %v960_v33  ;;  %v602_v3 = vrot.slane %v601_v24, 1  ;;  %v2040_v44 = vpack.c.bf16 %v869_v26, %v868_v20  ;;  %v3758_v16 = vld [vmem:[%s4210_s1 + $0x730] sm:$0xff]  ;;  %v2042_v40 = vpack.c.bf16 %v853_v18, %v852_v48  ;;  %v3783_v42 = vld [vmem:[%s4210_s1 + $0x648] sm:$0xff]  ;;  %v3788_v54 = vld [vmem:[%s4210_s1 + $0x7c0] sm:$0xff]  ;;  %v2066_v34 = vpack.c.bf16 %v3678_v51, %v3673_v21 }
  0x8d   :  { %2035 = vmatpush3.bf16.msra.mxu0 %v2034_v50  ;;  %v379_v38 = vrot.slane %v378_v0, 2  ;;  %v586_v23 = vadd.f32 %v585_v4, %v584_v63  ;;  %v3793_v13 = vld [vmem:[%s4210_s1 + $0x7c8] sm:$0xff]  ;;  %v2044_v8 = vpack.c.bf16 %v871_v36, %v3709_v11  ;;  %v3801_v30 = vld [vmem:[%s4210_s1 + $0x740] sm:$0xff]  ;;  %v3811_v7 = vld [vmem:[%s4210_s1 + $0x6d0] sm:$0xff]  ;;  %v2068_v32 = vpack.c.bf16 %v3688_v61, %v3683_v58 }
  0x8e   :  { %2031 = vmatpush3.bf16.msra.mxu1 %v2030_v22  ;;  %v603_v28 = vadd.f32 %v602_v3, %v601_v24  ;;  %2037 = vmatprep.subr.bf16.mxu0 %v2036_v59  ;;  %v3806_v10 = vld [vmem:[%s4210_s1 + $0x748] sm:$0xff]  ;;  %v3816_v29 = vld [vmem:[%s4210_s1 + $0x6d8] sm:$0xff]  ;;  %v3821_v49 = vld [vmem:[%s4210_s1 + $0x650] sm:$0xff]  ;;  %v2070_v2 = vpack.c.bf16 %v3698_v15, %v3693_v14  ;;  %v2072_v59 = vpack.c.bf16 %v3719_v60, %v3714_v55 }
  0x8f   :  { %2065 = vmatprep.subr.bf16.mxu1 %v2064_v47  ;;  %v380_v1 = vadd.f32 %v379_v38, %v378_v0  ;;  %v587_v17 = vrot.slane %v586_v23, 2  ;;  %v3826_v22 = vld [vmem:[%s4210_s1 + $0x658] sm:$0xff]  ;;  %v28_v43 = vld [vmem:[%s4209_s0 + $0x68] sm:$0xff]  ;;  %v3841_v63 = vld [vmem:[%s4210_s1 + $0x7d0] sm:$0xff]  ;;  %v2074_v19 = vpack.c.bf16 %v3729_v56, %v3724_v6  ;;  %v2046_v9 = vpack.c.bf16 %v3742_v41, %v3737_v37 }
  0x90   :  { %v963_v46 = vsel %vm951_vm1, %v603_v28, %v395_v31  ;;  %v44_v50 = vld [vmem:[%s4209_s0 + $0xe8] sm:$0xff]  ;;  %v3846_v24 = vld [vmem:[%s4210_s1 + $0x7d8] sm:$0xff]  ;;  %v3860_v33 = vld [vmem:[%s4210_s1 + $0x750] sm:$0xff]  ;;  %v2048_v58 = vpack.c.bf16 %v3773_v5, %v3768_v57  ;;  %v2050_v18 = vpack.c.bf16 %v3783_v42, %v3778_v62  ;;  %v2054_v62 = vpack.c.bf16 %v3826_v22, %v3821_v49 }
  0x91   :  { %1398 = vmatprep.mubr.f32.mxu1 %v963_v46  ;;  %v381_v25 = vrot.slane %v380_v1, 1  ;;  %v588_v35 = vadd.f32 %v587_v17, %v586_v23  ;;  %2039 = vmatpush3.bf16.msra.mxu0 %v2038_v52  ;;  %v60_v47 = vld [vmem:[%s4209_s0 + $0x168] sm:$0xff]  ;;  %v3865_v0 = vld [vmem:[%s4210_s1 + $0x758] sm:$0xff]  ;;  %v3870_v4 = vld [vmem:[%s4210_s1 + $0x6e0] sm:$0xff]  ;;  %v409_v38 = vadd.f32 %v44_v50, %v28_v43  ;;  %v2076_v52 = vpack.c.bf16 %v3753_v53, %v3748_v45 }
  0x92   :  { %2041 = vmatprep.subr.bf16.mxu0 %v2040_v44  ;;  %v3875_v20 = vld [vmem:[%s4210_s1 + $0x6e8] sm:$0xff]  ;;  %v3880_v26 = vld [vmem:[%s4210_s1 + $0x660] sm:$0xff]  ;;  %v3945_v42 = vld [vmem:[%s4210_s1 + $0x6f0] sm:$0xff] }
  0x93   :  { %v382_v27 = vadd.f32 %v381_v25, %v380_v1  ;;  %v589_v12 = vrot.slane %v588_v35, 1  ;;  %v3885_v31 = vld [vmem:[%s4210_s1 + $0x668] sm:$0xff]  ;;  %v3912_v1 = vld [vmem:[%s4210_s1 + $0x7e0] sm:$0xff]  ;;  %v410_v57 = vadd.f32 %v409_v38, %v60_v47  ;;  %v46_v28 = vld [vmem:[%s4209_s0 + $0xf8] sm:$0xff] }
  0x94   :  { %v140_v3 = vld [vmem:[%s4209_s0 + $0x3e8] sm:$0xff]  ;;  %v3922_v36 = vld [vmem:[%s4210_s1 + $0x760] sm:$0xff]  ;;  %v126_v14 = vld [vmem:[%s4209_s0 + $0x378] sm:$0x1] }
  0x95   :  { %v590_v23 = vadd.f32 %v589_v12, %v588_v35  ;;  %2043 = vmatpush3.bf16.msra.mxu0 %v2042_v40  ;;  %v76_v61 = vld [vmem:[%s4209_s0 + $0x1e8] sm:$0xff]  ;;  %v2052_v40 = vpack.c.bf16 %v3816_v29, %v3811_v7  ;;  %v27_v43 = vld [vmem:[%s4209_s0 + $0x60] sm:$0xff]  ;;  %v3971_v12 = vld [vmem:[%s4210_s1 + $0x678] sm:$0xff]  ;;  %v2056_v35 = vpack.c.bf16 %v3875_v20, %v3870_v4 }
  0x96   :  { %v156_v44 = vld [vmem:[%s4209_s0 + $0x468] sm:$0xff]  ;;  %2045 = vmatprep.subr.bf16.mxu0 %v2044_v8  ;;  %v3950_v8 = vld [vmem:[%s4210_s1 + $0x6f8] sm:$0xff]  ;;  %v43_v7 = vld [vmem:[%s4209_s0 + $0xe0] sm:$0xff] }
  0x97   :  { %v172_v48 = vld [vmem:[%s4209_s0 + $0x4e8] sm:$0xff]  ;;  %v617_v5 = vadd.f32 %v156_v44, %v140_v3  ;;  %v962_v25 = vsel %vm951_vm1, %v590_v23, %v382_v27  ;;  %v59_v29 = vld [vmem:[%s4209_s0 + $0x160] sm:$0xff]  ;;  %v3966_v27 = vld [vmem:[%s4210_s1 + $0x670] sm:$0xff]  ;;  %v411_v23 = vadd.f32 %v410_v57, %v76_v61 }
  0x98   :  { %v3917_v17 = vld [vmem:[%s4210_s1 + $0x7e8] sm:$0xff]  ;;  %1399 = vmatmul.mubr.f32.vlgmr.msra.gmra.mrb[4].mxu1 %v962_v25  ;;  %v396_v25 = vadd.f32 %v43_v7, %v27_v43  ;;  %v139_v21 = vld [vmem:[%s4209_s0 + $0x3e0] sm:$0xff]  ;;  %v110_v22 = vld [vmem:[%s4209_s0 + $0x2f8] sm:$0xff] }
  0x99   :  { %v3927_v37 = vld [vmem:[%s4210_s1 + $0x768] sm:$0xff]  ;;  %v618_v44 = vadd.f32 %v617_v5, %v172_v48  ;;  %2067 = vmatpush3.bf16.msra.mxu1 %v2066_v34  ;;  %2047 = vmatpush3.bf16.msra.mxu0 %v2046_v9  ;;  %v75_v48 = vld [vmem:[%s4209_s0 + $0x1e0] sm:$0xff]  ;;  %v125_v45 = vld [vmem:[%s4209_s0 + $0x370] sm:$0x1] }
  0x9a   :  { %v92_v41 = vld [vmem:[%s4209_s0 + $0x268] sm:$0xff]  ;;  %v155_v51 = vld [vmem:[%s4209_s0 + $0x460] sm:$0xff]  ;;  %2069 = vmatprep.subr.bf16.mxu1 %v2068_v32  ;;  %2049 = vmatprep.subr.bf16.mxu0 %v2048_v58  ;;  %v397_v7 = vadd.f32 %v396_v25, %v59_v29 }
  0x9b   :  { %v188_v46 = vld [vmem:[%s4209_s0 + $0x568] sm:$0xff]  ;;  %v412_v9 = vadd.f32 %v411_v23, %v92_v41  ;;  %v91_v5 = vld [vmem:[%s4209_s0 + $0x260] sm:$0xff]  ;;  %v604_v23 = vadd.f32 %v155_v51, %v139_v21  ;;  %v62_v21 = vld [vmem:[%s4209_s0 + $0x178] sm:$0xff] }
  0x9c   :  { %v108_v47 = vld [vmem:[%s4209_s0 + $0x2e8] sm:$0xff]  ;;  %v619_v57 = vadd.f32 %v618_v44, %v188_v46  ;;  %v171_v43 = vld [vmem:[%s4209_s0 + $0x4e0] sm:$0xff]  ;;  %v30_v44 = vld [vmem:[%s4209_s0 + $0x78] sm:$0xff]  ;;  %v398_v11 = vadd.f32 %v397_v7, %v75_v48 }
  0x9d   :  { %v124_v3 = vld [vmem:[%s4209_s0 + $0x368] sm:$0x1]  ;;  %v107_v41 = vld [vmem:[%s4209_s0 + $0x2e0] sm:$0xff]  ;;  %v413_v25 = vadd.f32 %v412_v9, %v108_v47  ;;  %2071 = vmatpush3.bf16.msra.mxu1 %v2070_v2  ;;  %2051 = vmatpush3.bf16.msra.mxu0 %v2050_v18  ;;  %v2062_v47 = vpack.c.bf16 %v3971_v12, %v3966_v27  ;;  %v605_v51 = vadd.f32 %v604_v23, %v171_v43  ;;  %v78_v9 = vld [vmem:[%s4209_s0 + $0x1f8] sm:$0xff] }
  0x9e   :  { %v204_v38 = vld [vmem:[%s4209_s0 + $0x5e8] sm:$0xff]  ;;  %v414_v58 = vsel %vm244_vm0, %v124_v3, 0.0  ;;  %v123_v46 = vld [vmem:[%s4209_s0 + $0x360] sm:$0x1]  ;;  %v2060_v3 = vpack.c.bf16 %v3950_v8, %v3945_v42  ;;  %v435_v15 = vadd.f32 %v46_v28, %v30_v44  ;;  %2073 = vmatprep.subr.bf16.mxu1 %v2072_v59  ;;  %2053 = vmatprep.subr.bf16.mxu0 %v2052_v40  ;;  %v158_v43 = vld [vmem:[%s4209_s0 + $0x478] sm:$0xff] }
  0x9f   :  { %v220_v61 = vld [vmem:[%s4209_s0 + $0x668] sm:$0xff]  ;;  %v187_v29 = vld [vmem:[%s4209_s0 + $0x560] sm:$0xff]  ;;  %v620_v32 = vadd.f32 %v619_v57, %v204_v38  ;;  %v415_v2 = vadd.f32 %v414_v58, %v413_v25  ;;  %v142_v57 = vld [vmem:[%s4209_s0 + $0x3f8] sm:$0xff]  ;;  %v401_v60 = vsel %vm244_vm0, %v123_v46, 0.0 }
  0xa0   :  { %v236_v34 = vld [vmem:[%s4209_s0 + $0x6e8] sm:$0x1]  ;;  %v203_v50 = vld [vmem:[%s4209_s0 + $0x5e0] sm:$0xff]  ;;  %v174_v28 = vld [vmem:[%s4209_s0 + $0x4f8] sm:$0xff]  ;;  %v606_v59 = vadd.f32 %v605_v51, %v187_v29 }
  0xa1   :  { %v622_v38 = vsel %vm244_vm0, %v236_v34, 0.0  ;;  %v235_v48 = vld [vmem:[%s4209_s0 + $0x6e0] sm:$0x1]  ;;  %v621_v18 = vadd.f32 %v620_v32, %v220_v61  ;;  %v399_v34 = vadd.f32 %v398_v11, %v91_v5  ;;  %v94_v11 = vld [vmem:[%s4209_s0 + $0x278] sm:$0xff]  ;;  %v436_v61 = vadd.f32 %v435_v15, %v62_v21  ;;  %v29_v29 = vld [vmem:[%s4209_s0 + $0x70] sm:$0xff]  ;;  %2075 = vmatpush3.bf16.msra.mxu1 %v2074_v19  ;;  %2055 = vmatpush3.bf16.msra.mxu0 %v2054_v62 }
  0xa2   :  { %v219_v55 = vld [vmem:[%s4209_s0 + $0x660] sm:$0xff]  ;;  %v190_v40 = vld [vmem:[%s4209_s0 + $0x578] sm:$0xff]  ;;  %v643_v5 = vadd.f32 %v158_v43, %v142_v57  ;;  %v416_v7 = vrot.slane %v415_v2, 4  ;;  %v609_v23 = vsel %vm244_vm0, %v235_v48, 0.0  ;;  %v45_v44 = vld [vmem:[%s4209_s0 + $0xf0] sm:$0xff]  ;;  %v440_v21 = vsel %vm244_vm0, %v126_v14, 0.0  ;;  %2077 = vmatprep.subr.bf16.mxu1 %v2076_v52  ;;  %2057 = vmatprep.subr.bf16.mxu0 %v2056_v35 }
  0xa3   :  { %v623_v32 = vadd.f32 %v622_v38, %v621_v18  ;;  %v400_v58 = vadd.f32 %v399_v34, %v107_v41  ;;  %v238_v46 = vld [vmem:[%s4209_s0 + $0x6f8] sm:$0x1]  ;;  %v607_v41 = vadd.f32 %v606_v59, %v203_v50  ;;  %v437_v25 = vadd.f32 %v436_v61, %v78_v9  ;;  %v61_v48 = vld [vmem:[%s4209_s0 + $0x170] sm:$0xff] }
  0xa4   :  { %v644_v38 = vadd.f32 %v643_v5, %v174_v28  ;;  %v417_v6 = vadd.f32 %v416_v7, %v415_v2  ;;  %v206_v19 = vld [vmem:[%s4209_s0 + $0x5f8] sm:$0xff]  ;;  %v422_v53 = vadd.f32 %v45_v44, %v29_v29  ;;  %v648_v20 = vsel %vm244_vm0, %v238_v46, 0.0  ;;  %v77_v35 = vld [vmem:[%s4209_s0 + $0x1f0] sm:$0xff] }
  0xa5   :  { %v624_v56 = vrot.slane %v623_v32, 4  ;;  %v402_v49 = vadd.f32 %v401_v60, %v400_v58  ;;  %v608_v52 = vadd.f32 %v607_v41, %v219_v55  ;;  %v438_v62 = vadd.f32 %v437_v25, %v94_v11  ;;  %v222_v14 = vld [vmem:[%s4209_s0 + $0x678] sm:$0xff]  ;;  %v141_v15 = vld [vmem:[%s4209_s0 + $0x3f0] sm:$0xff] }
  0xa6   :  { %v645_v4 = vadd.f32 %v644_v38, %v190_v40  ;;  %v418_v50 = vrot.slane %v417_v6, 2  ;;  %v157_v2 = vld [vmem:[%s4209_s0 + $0x470] sm:$0xff]  ;;  %v423_v18 = vadd.f32 %v422_v53, %v61_v48  ;;  %v4218_v34 = vpack.c.bf16 %v3763_v39, %v3758_v16 }
  0xa7   :  { %v625_v51 = vadd.f32 %v624_v56, %v623_v32  ;;  %v403_v9 = vrot.slane %v402_v49, 4  ;;  %v4219_v57 = vpack.c.bf16 %v3885_v31, %v3880_v26  ;;  %v610_v43 = vadd.f32 %v609_v23, %v608_v52  ;;  %v93_v60 = vld [vmem:[%s4209_s0 + $0x270] sm:$0xff] }
  0xa8   :  { %2079 = vmatpush3.bf16.msra.mxu1 %v4218_v34  ;;  %v439_v28 = vadd.f32 %v438_v62, %v110_v22  ;;  %v646_v55 = vadd.f32 %v645_v4, %v206_v19  ;;  %v427_v59 = vsel %vm244_vm0, %v125_v45, 0.0 }
  0xa9   :  { %2059 = vmatpush3.bf16.msra.mxu0 %v4219_v57 }
  0xaa   :  { %8 = vsyncpa [#allocation3], 0  ;;  %v4220_v11 = vpack.c.bf16 %v3793_v13, %v3788_v54  ;;  %2061 = vmatprep.subr.bf16.mxu0 %v2060_v3  ;;  %v419_v16 = vadd.f32 %v418_v50, %v417_v6  ;;  %v626_v39 = vrot.slane %v625_v51, 2  ;;  %v404_v26 = vadd.f32 %v403_v9, %v402_v49  ;;  %v173_v31 = vld [vmem:[%s4209_s0 + $0x4f0] sm:$0xff]  ;;  %v911_v29 = vld [vmem:[%s4210_s1 + $0x7f8] sm:$0xff] }
  0xab   :  { %v424_v40 = vadd.f32 %v423_v18, %v77_v35  ;;  %v611_v61 = vrot.slane %v610_v43, 4  ;;  %v441_v5 = vadd.f32 %v440_v21, %v439_v28  ;;  %v647_v7 = vadd.f32 %v646_v55, %v222_v14  ;;  %v109_v54 = vld [vmem:[%s4209_s0 + $0x2f0] sm:$0xff]  ;;  %v895_v4 = vld [vmem:[%s4210_s1 + $0x778] sm:$0xff] }
  0xac   :  { %2081 = vmatprep.subr.bf16.mxu1 %v4220_v11  ;;  %v630_v13 = vadd.f32 %v157_v2, %v141_v15  ;;  %v420_v32 = vrot.slane %v419_v16, 1  ;;  %v627_v58 = vadd.f32 %v626_v39, %v625_v51  ;;  %v405_v42 = vrot.slane %v404_v26, 2  ;;  %v189_v8 = vld [vmem:[%s4209_s0 + $0x570] sm:$0xff] }
  0xad   :  { %v425_v3 = vadd.f32 %v424_v40, %v93_v60  ;;  %v4221_v23 = vpack.c.bf16 %v3806_v10, %v3801_v30  ;;  %2063 = vmatpush3.bf16.msra.mxu0 %v2062_v47  ;;  %v910_v46 = vld [vmem:[%s4210_s1 + $0x7f0] sm:$0xff]  ;;  %v612_v44 = vadd.f32 %v611_v61, %v610_v43  ;;  %v442_v41 = vrot.slane %v441_v5, 4 }
  0xae   :  { %v649_v25 = vadd.f32 %v648_v20, %v647_v7  ;;  %v631_v21 = vadd.f32 %v630_v13, %v173_v31  ;;  %v4222_v30 = vpack.c.bf16 %v3846_v24, %v3841_v63  ;;  %v421_v10 = vadd.f32 %v420_v32, %v419_v16  ;;  %v205_v12 = vld [vmem:[%s4209_s0 + $0x5f0] sm:$0xff] }
  0xaf   :  { %2083 = vmatpush3.bf16.msra.mxu1 %v4221_v23  ;;  %v628_v38 = vrot.slane %v627_v58, 1  ;;  %v406_v27 = vadd.f32 %v405_v42, %v404_v26  ;;  %v426_v47 = vadd.f32 %v425_v3, %v109_v54  ;;  %v613_v48 = vrot.slane %v612_v44, 2  ;;  %v237_v49 = vld [vmem:[%s4209_s0 + $0x6f0] sm:$0x1] }
  0xb0   :  { %2085 = vmatprep.subr.bf16.mxu1 %v4222_v30  ;;  %v443_v6 = vadd.f32 %v442_v41, %v441_v5  ;;  %v650_v56 = vrot.slane %v649_v25, 4  ;;  %v632_v22 = vadd.f32 %v631_v21, %v189_v8  ;;  %v2092_v19 = vpack.c.bf16 %v911_v29, %v910_v46  ;;  %v221_v24 = vld [vmem:[%s4209_s0 + $0x670] sm:$0xff]  ;;  %v1559_v46 = vld [vmem:[%s4211_s2] ss:$0 sm:$0xff]  ;;  %s2121_s2 = smov [#allocation2]  }
  0xb1   :  { %v629_v45 = vadd.f32 %v628_v38, %v627_v58  ;;  %v407_v63 = vrot.slane %v406_v27, 1  ;;  %v428_v53 = vadd.f32 %v427_v59, %v426_v47  ;;  %v4223_v52 = vpack.c.bf16 %v3865_v0, %v3860_v33  ;;  %v894_v62 = vld [vmem:[%s4210_s1 + $0x770] sm:$0xff]  ;;  %s1551_s27 = sshll.u32 %s2121_s2, 4  ;;  %s1552_s27 = int_to_ptr.vmem [resolvable:$true] %s1551_s27 }
  0xb2   :  { %v614_v20 = vadd.f32 %v613_v48, %v612_v44  ;;  %v444_v35 = vrot.slane %v443_v6, 2  ;;  %v651_v50 = vadd.f32 %v650_v56, %v649_v25  ;;  %v633_v51 = vadd.f32 %v632_v22, %v205_v12  ;;  %s2097_s28 = scalar_lea.vmem %s1552_s27, 32  ;;  %p2102_p1 = scmp.lt.s32.totalorder %s1552_s27, %s1552_s27 }
  0xb3   :  { %2087 = vmatpush3.bf16.msra.mxu1 %v4223_v52  ;;  %v4224_v9 = vpack.c.bf16 %v3917_v17, %v3912_v1  ;;  %v965_v14 = vsel %vm951_vm1, %v629_v45, %v421_v10  ;;  %v408_v33 = vadd.f32 %v407_v63, %v406_v27  ;;  %v429_v0 = vrot.slane %v428_v53, 4  ;;  %p2098_p0 = scmp.ne.s32.totalorder %s1552_s27, %s2097_s28  ;;  %p2103_p2 = scmp.lt.s32.totalorder %s2097_s28, %s2097_s28 }
  0xb4   :  { %v635_v15 = vsel %vm244_vm0, %v237_v49, 0.0  ;;  %1468 = vmatprep.mubr.f32.mxu0 %v965_v14  ;;  %v615_v2 = vrot.slane %v614_v20, 1  ;;  %v445_v18 = vadd.f32 %v444_v35, %v443_v6  ;;  %v652_v34 = vrot.slane %v651_v50, 2 }
  0xb5   :  { %2089 = vmatprep.subr.bf16.mxu1 %v4224_v9  ;;  %v634_v57 = vadd.f32 %v633_v51, %v221_v24  ;;  %v2094_v43 = vpack.c.bf16 %v895_v4, %v894_v62  ;;  %v430_v28 = vadd.f32 %v429_v0, %v428_v53  ;;  %v4225_v55 = vpack.c.bf16 %v3927_v37, %v3922_v36  ;;  %p2104_p3 = por %p2103_p2, %p2102_p1 }
  0xb6   :  { %v616_v60 = vadd.f32 %v615_v2, %v614_v20  ;;  %v446_v1 = vrot.slane %v445_v18, 1  ;;  %v653_v17 = vadd.f32 %v652_v34, %v651_v50 }
  0xb7   :  { %2091 = vmatpush3.bf16.msra.mxu1 %v4225_v55  ;;  %v636_v59 = vadd.f32 %v635_v15, %v634_v57  ;;  %v431_v11 = vrot.slane %v430_v28, 2  ;;  %p2105_p4 = pnand %p2104_p3, %p2098_p0 }
  0xb8   :  { %2093 = vmatprep.subr.bf16.mxu1 %v2092_v19  ;;  %v964_v16 = vsel %vm951_vm1, %v616_v60, %v408_v33  ;;  %v447_v39 = vadd.f32 %v446_v1, %v445_v18  ;;  %v654_v26 = vrot.slane %v653_v17, 1 }
  0xb9   :  { %v637_v31 = vrot.slane %v636_v59, 4  ;;  %1469 = vmatmul.mubr.f32.vlgmr.msra.gmra.mrb[6].mxu0 %v964_v16  ;;  %v432_v40 = vadd.f32 %v431_v11, %v430_v28 }
  0xba   :  { %v655_v61 = vadd.f32 %v654_v26, %v653_v17 }
  0xbb   :  { %2095 = vmatpush3.bf16.msra.mxu1 %v2094_v43  ;;  %v638_v5 = vadd.f32 %v637_v31, %v636_v59  ;;  %v433_v36 = vrot.slane %v432_v40, 1 }
  0xbc   :  { %v967_v7 = vsel %vm951_vm1, %v655_v61, %v447_v39 }
  0xbd   :  { %v639_v37 = vrot.slane %v638_v5, 2  ;;  %1538 = vmatprep.mubr.f32.mxu1 %v967_v7  ;;  %v434_v13 = vadd.f32 %v433_v36, %v432_v40 }
  0xbf   :  { %v640_v54 = vadd.f32 %v639_v37, %v638_v5 }
  0xc1   :  { %v641_v32 = vrot.slane %v640_v54, 1 }
  0xc3   :  { %v642_v58 = vadd.f32 %v641_v32, %v640_v54 }
  0xc5   :  { %v966_v42 = vsel %vm951_vm1, %v642_v58, %v434_v13 }
  0xc6   :  { %1539 = vmatmul.mubr.f32.vlgmr.msra.gmra.mrb[6].mxu1 %v966_v42 }
 0x10a   :  { %v1592_v8 = vpop.f32.mrb[0].mxu0 }
 0x10b   :  { %v1593_v3 = vpop.f32.mrb[1].mxu0 }
 0x10c   :  { %v1594_v23 = vadd.f32 %v1593_v3, %v1592_v8 }
 0x10e   :  { %v1051_v29 = vadd.f32 %v1594_v23, %v1559_v46 }
 0x116   :  { %v1627_v44 = vpop.f32.mrb[0].mxu1 }
 0x117   :  { %v1628_v41 = vpop.f32.mrb[1].mxu1 }
 0x118   :  { %v1629_v25 = vadd.f32 %v1628_v41, %v1627_v44 }
 0x11a   :  { %v1121_v21 = vadd.f32 %v1629_v25, %v1051_v29 }
 0x133   :  { %v1662_v30 = vpop.f32.mrb[2].mxu0 }
 0x134   :  { %v1663_v10 = vpop.f32.mrb[3].mxu0 }
 0x135   :  { %v1664_v38 = vadd.f32 %v1663_v10, %v1662_v30 }
 0x137   :  { %v1191_v27 = vadd.f32 %v1664_v38, %v1121_v21 }
 0x13f   :  { %v1697_v12 = vpop.f32.mrb[2].mxu1 }
 0x140   :  { %v1698_v47 = vpop.f32.mrb[3].mxu1 }
 0x141   :  { %v1699_v48 = vadd.f32 %v1698_v47, %v1697_v12 }
 0x143   :  { %v1261_v6 = vadd.f32 %v1699_v48, %v1191_v27 }
 0x15f   :  { %v1732_v56 = vpop.f32.mrb[4].mxu0 }
 0x160   :  { %v1733_v49 = vpop.f32.mrb[5].mxu0 }
 0x161   :  { %v1734_v22 = vadd.f32 %v1733_v49, %v1732_v56 }
 0x163   :  { %v1331_v19 = vadd.f32 %v1734_v22, %v1261_v6 }
 0x16b   :  { %v1767_v45 = vpop.f32.mrb[4].mxu1 }
 0x16c   :  { %v1768_v63 = vpop.f32.mrb[5].mxu1 }
 0x16d   :  { %v1769_v24 = vadd.f32 %v1768_v63, %v1767_v45 }
 0x16f   :  { %v1401_v53 = vadd.f32 %v1769_v24, %v1331_v19 }
 0x18c   :  { %v1802_v52 = vpop.f32.mrb[6].mxu0 }
 0x18d   :  { %v1803_v62 = vpop.f32.mrb[7].mxu0 }
 0x18e   :  { %v1804_v4 = vadd.f32 %v1803_v62, %v1802_v52 }
 0x190   :  { %v1471_v20 = vadd.f32 %v1804_v4, %v1401_v53 }
 0x199   :  { %v1837_v35 = vpop.f32.mrb[6].mxu1 }
 0x19a   :  { %v1838_v50 = vpop.f32.mrb[7].mxu1 }
 0x19b   :  { %v1839_v51 = vadd.f32 %v1838_v50, %v1837_v35 }
 0x19d   :  { %v1541_v9 = vadd.f32 %v1839_v51, %v1471_v20 }
 0x19f   :  { %1544 = vst [vmem:[#allocation2] sm:$0x3] %v1541_v9 }
 0x1a0   :  { %2108 = shalt.err (!%p2105_p4)
}
 0x1a1   :  { %s2109_s4 = scalar_lea.hbm %s4212_s3, 32 }
 0x1a2   :  { %p2110_p5 = scmp.ne.s32.totalorder %s4212_s3, %s2109_s4  ;;  %p2113_p6 = scmp.lt.u32.totalorder %s2109_s4, %s4212_s3 }
 0x1a4   :  { %p2115_p7 = pnand %p2113_p6, %p2110_p5 }
 0x1a6   :  { %2118 = shalt.err (!%p2115_p7)
}
 0x1a7   :  { %1554 = dma.vmem_to_hbm [thread:$0]  %s1552_s27, 32, %s4212_s3, [#allocation3]  }
 0x1a8   :  { %2119 = dma.done.wait [#allocation3], 32  }
 0x1a9   :  { %2120 = vsyncadd [#allocation3], 4294967264 }
 0x1aa   :  { %1558 = vsyncpa [#allocation3], 1 }

</bundles_post_ra>
